<compile_context>
chip_gen: v6e
topology: v6e:2x2x1
jax: 0.10.0
libtpu: 0.0.40
codegen_flags: <defaults>
</compile_context>

<pallas_src>
import numpy as np
import jax
import jax.numpy as jnp
from jax.experimental import pallas as pl
from jax.experimental.pallas import tpu as pltpu

HID = 32                       # fc1/fc2/fc3/LSTM width (fixed by the module)
IMG_H, IMG_W, IMG_C = 15, 15, 3
FEAT = IMG_H * IMG_W * IMG_C   # 675 raw pixels per frame
CONV_OH = IMG_H - 2            # 13 (3x3 conv, stride 1, no padding)


# ---------------------------------------------------------------------------
# Single fused kernel: folded conv+fc1 -> ReLU -> fc2 -> ReLU -> fc3 -> ReLU
# -> LSTM (zero initial state) -> action_out.  One batch-block per grid step.
def actor_fused_kernel(x_ref, wf_ref, bf_ref, w2_ref, b2_ref, w3_ref, b3_ref,
                       wih_ref, whh_ref, bg_ref, wo_ref, bo_ref,
                       o_ref, gx_ref, hs_ref):
    bb, T, _ = gx_ref.shape
    M = bb * T

    # Embedding trunk: three K-dense MXU matmuls over all bb*T rows at once.
    # x_ref may be bf16 (halved DMA traffic); accumulation is always f32.
    h = jnp.maximum(jnp.dot(x_ref[...], wf_ref[...],
                            preferred_element_type=jnp.float32) + bf_ref[...], 0.0)
    h = jnp.maximum(jnp.dot(h, w2_ref[...],
                            preferred_element_type=jnp.float32) + b2_ref[...], 0.0)
    h = jnp.maximum(jnp.dot(h, w3_ref[...],
                            preferred_element_type=jnp.float32) + b3_ref[...], 0.0)

    # Input->gate contribution for ALL timesteps in one matmul, stashed in a
    # VMEM scratch (not carried as a value) so vreg pressure stays flat across
    # the unrolled recurrence.  (bb*T,128) -> (bb,T,128) is 128-lane aligned.
    gx_ref[...] = (jnp.dot(h, wih_ref[...], preferred_element_type=jnp.float32)
                   + bg_ref[...]).reshape(bb, T, 4 * HID)

    whh = whh_ref[...]

    # LSTM over time: fully unrolled static loop (T is a small rollout length),
    # h/c carried as values.  Gate order (i, f, g, o) = torch.nn.LSTM.
    h_t = jnp.zeros((bb, HID), jnp.float32)
    c_t = jnp.zeros((bb, HID), jnp.float32)
    for t in range(T):
        g = gx_ref[:, t, :] + jnp.dot(h_t, whh,
                                      preferred_element_type=jnp.float32)
        sg = jax.nn.sigmoid(g)          # full 128-lane width -> EUP
        th = jnp.tanh(g)                # full 128-lane width -> EUP
        i_g = sg[:, 0 * HID:1 * HID]
        f_g = sg[:, 1 * HID:2 * HID]
        g_g = th[:, 2 * HID:3 * HID]
        o_g = sg[:, 3 * HID:4 * HID]
        c_t = f_g * c_t + i_g * g_g
        h_t = o_g * jnp.tanh(c_t)
        hs_ref[:, t, :] = h_t           # tiny VMEM scratch write, not HBM out

    # action_out hoisted out of the recurrence: ONE matmul + ONE block store.
    hs = hs_ref[...].reshape(M, HID)
    o_ref[...] = (jnp.dot(hs, wo_ref[...], preferred_element_type=jnp.float32)
                  + bo_ref[...])


# ---------------------------------------------------------------------------
def _pick_bb(B, T):
    """Batch block: >=2 grid steps whenever B>=2 (v7x megacore), bb*T ~ 256
    rows for large B (v5e/v6e MXU fill / DMA size), bb divides B, and the
    block row count keeps the (8,128) layout rule satisfied."""
    bb = min(B, max(1, 256 // T))
    if B >= 2:
        bb = min(bb, (B + 1) // 2)          # at least two grid steps
    while bb > 1 and B % bb != 0:
        bb -= 1
    if (bb * T) % 8 != 0:
        bb = B                              # full-array block is always legal
    return max(bb, 1)


def actor_forward(obs, kp, *, batch_block=None):
    """obs: [B, T, 15, 15, 3] float32, kp: prepared params -> [B, T, A]."""
    B, T, Hh, Ww, Cin = obs.shape
    assert (Hh, Ww, Cin) == (IMG_H, IMG_W, IMG_C)
    A = kp["wo"].shape[-1]

    bb = _pick_bb(B, T) if batch_block is None else batch_block
    assert B % bb == 0, "batch block must divide B (pad B in the caller)"
    grid = (B // bb,)

    # Wrapper-side reshape is metadata-only.  Cast obs to bf16 (halves the
    # dominant obs DMA) only when the block row count is bf16-tile friendly;
    # ideally the caller already supplies bf16 obs so the cast fuses upstream.
    in_dtype = jnp.bfloat16 if (bb * T) % 16 == 0 else jnp.float32
    x = obs.reshape(B * T, FEAT).astype(in_dtype)

    def bcast(shape):
        n = len(shape)
        return pl.BlockSpec(shape, lambda i, n=n: (0,) * n)

    out = pl.pallas_call(
        actor_fused_kernel,
        out_shape=jax.ShapeDtypeStruct((B * T, A), jnp.float32),
        grid=grid,
        in_specs=[
            pl.BlockSpec((bb * T, FEAT), lambda i: (i, 0)),
            bcast(kp["wf"].shape), bcast(kp["bf"].shape),
            bcast(kp["w2"].shape), bcast(kp["b2"].shape),
            bcast(kp["w3"].shape), bcast(kp["b3"].shape),
            bcast(kp["wih"].shape), bcast(kp["whh"].shape),
            bcast(kp["bg"].shape),
            bcast(kp["wo"].shape), bcast(kp["bo"].shape),
        ],
        out_specs=pl.BlockSpec((bb * T, A), lambda i: (i, 0)),
        scratch_shapes=[pltpu.VMEM((bb, T, 4 * HID), jnp.float32),   # gx
                        pltpu.VMEM((bb, T, HID), jnp.float32)],      # hidden states
        compiler_params=pltpu.CompilerParams(
            dimension_semantics=("parallel",)),
    )(x, kp["wf"], kp["bf"], kp["w2"], kp["b2"], kp["w3"], kp["b3"],
      kp["wih"], kp["whh"], kp["bg"], kp["wo"], kp["bo"])

    return out.reshape(B, T, A)              # metadata-only


# ---------------------------------------------------------------------------
def prepare_params(p):
    """One-time (outside the hot path) weight preparation.

    Folds cnn + (C,H,W)-flatten + fc1 into a single [675, 32] linear map on the
    raw pixels (valid because the conv has no activation), and transposes the
    remaining torch-layout weights into `x @ W` form with biases as [1, N].
    """
    hp = jax.lax.Precision.HIGHEST
    wc = p["wc"].astype(jnp.float32)                          # [6,3,3,3] (co,ci,kh,kw)
    W1 = p["w1"].astype(jnp.float32).reshape(HID, 6, CONV_OH, CONV_OH)  # [j,co,oy,ox]

    wbig = jnp.zeros((IMG_H, IMG_W, IMG_C, HID), jnp.float32)
    for kh in range(3):
        for kw in range(3):
            # contrib[oy, ox, ci, j] = sum_co wc[co, ci, kh, kw] * W1[j, co, oy, ox]
            contrib = jnp.einsum("oc,joyx->yxcj", wc[:, :, kh, kw], W1,
                                 precision=hp)
            wbig = wbig.at[kh:kh + CONV_OH, kw:kw + CONV_OH].add(contrib)
    wf = wbig.reshape(FEAT, HID)
    bf = p["b1"] + jnp.einsum("o,joyx->j", p["bc"], W1, precision=hp)

    return {
        "wf": wf, "bf": bf[None, :],
        "w2": p["w2"].T, "b2": p["b2"][None, :],
        "w3": p["w3"].T, "b3": p["b3"][None, :],
        "wih": p["wih"].T, "whh": p["whh"].T,
        "bg": (p["bih"] + p["bhh"])[None, :],
        "wo": p["wo"].T, "bo": p["bo"][None, :],
    }


def init_params(key, action_num):
    """Synthetic parameters in torch-native layouts (see Actor.__init__)."""
    ks = jax.random.split(key, 14)
    s = 0.1
    return {
        "wc":  jax.random.normal(ks[0],  (6, 3, 3, 3), jnp.float32) * s,    # cnn.weight
        "bc":  jax.random.normal(ks[1],  (6,), jnp.float32) * s,            # cnn.bias
        "w1":  jax.random.normal(ks[2],  (HID, 169 * 6), jnp.float32) * s,  # fc1.weight
        "b1":  jax.random.normal(ks[3],  (HID,), jnp.float32) * s,
        "w2":  jax.random.normal(ks[4],  (HID, HID), jnp.float32) * s,      # fc2.weight
        "b2":  jax.random.normal(ks[5],  (HID,), jnp.float32) * s,
        "w3":  jax.random.normal(ks[6],  (HID, HID), jnp.float32) * s,      # fc3.weight
        "b3":  jax.random.normal(ks[7],  (HID,), jnp.float32) * s,
        "wih": jax.random.normal(ks[8],  (4 * HID, HID), jnp.float32) * s,  # weight_ih_l0
        "whh": jax.random.normal(ks[9],  (4 * HID, HID), jnp.float32) * s,  # weight_hh_l0
        "bih": jax.random.normal(ks[10], (4 * HID,), jnp.float32) * s,
        "bhh": jax.random.normal(ks[11], (4 * HID,), jnp.float32) * s,
        "wo":  jax.random.normal(ks[12], (action_num, HID), jnp.float32) * s,  # action_out.weight
        "bo":  jnp.zeros((action_num,), jnp.float32),
    }


def reference_forward(obs, p):
    """Pure-JAX mirror of the torch module (HIGHEST precision, for validation)."""
    B, T = obs.shape[:2]
    hp = jax.lax.Precision.HIGHEST
    x = obs.reshape(B * T, IMG_H, IMG_W, IMG_C).astype(jnp.float32)
    conv = jax.lax.conv_general_dilated(
        x, p["wc"], window_strides=(1, 1), padding="VALID",
        dimension_numbers=("NHWC", "OIHW", "NCHW"), precision=hp)
    conv = conv + p["bc"][None, :, None, None]
    flat = conv.reshape(B * T, 6 * 169)                  # (C,H,W) flatten, like torch
    h = jax.nn.relu(jnp.dot(flat, p["w1"].T, precision=hp) + p["b1"])
    h = jax.nn.relu(jnp.dot(h, p["w2"].T, precision=hp) + p["b2"])
    h = jax.nn.relu(jnp.dot(h, p["w3"].T, precision=hp) + p["b3"])
    xs = h.reshape(B, T, HID)

    hh = jnp.zeros((B, HID), jnp.float32)
    cc = jnp.zeros((B, HID), jnp.float32)
    wih_t, whh_t = p["wih"].T, p["whh"].T
    bg = p["bih"] + p["bhh"]
    outs = []
    for t in range(T):
        g = (jnp.dot(xs[:, t], wih_t, precision=hp)
             + jnp.dot(hh, whh_t, precision=hp) + bg)
        i = jax.nn.sigmoid(g[:, :HID])
        f = jax.nn.sigmoid(g[:, HID:2 * HID])
        gg = jnp.tanh(g[:, 2 * HID:3 * HID])
        o = jax.nn.sigmoid(g[:, 3 * HID:])
        cc = f * cc + i * gg
        hh = o * jnp.tanh(cc)
        outs.append(jnp.dot(hh, p["wo"].T, precision=hp) + p["bo"])
    return jnp.stack(outs, axis=1)


# ---------------------------------------------------------------------------
if __name__ == "__main__":
    key = jax.random.PRNGKey(0)
    k_obs, k_param = jax.random.split(key)

    B, T, action_num = 2, 8, 8
    obs = jax.random.uniform(k_obs, (B, T, IMG_H, IMG_W, IMG_C), jnp.float32)
    params = init_params(k_param, action_num)

    kparams = prepare_params(params)          # one-time weight fold / transpose

    logits = jax.jit(actor_forward)(obs, kparams)
    logits = jax.block_until_ready(logits)
    assert logits.shape == (B, T, action_num)

    # Tolerance accommodates reduced-precision f32 MXU passes inside the
    # kernel vs. the HIGHEST-precision pure-JAX reference.
    ref = reference_forward(obs, params)
    np.testing.assert_allclose(np.asarray(logits), np.asarray(ref),
                               rtol=2e-2, atol=2e-2)
    # TODO(synk): (h0, c0) warm-start branch of Actor.forward (returning
    # (x, h, c)) is not implemented; only the h0=None zero-state path is.
    print("KERNEL_OK")
</pallas_src>

<mosaic_0001>
module attributes {stable_mosaic.version = 11 : i64} {
  func.func @actor_fused_kernel(%arg0: i32, %arg1: memref<8x675xf32, #tpu.memory_space<vmem>>, %arg2: memref<675x32xf32, #tpu.memory_space<vmem>>, %arg3: memref<1x32xf32, #tpu.memory_space<vmem>>, %arg4: memref<32x32xf32, #tpu.memory_space<vmem>>, %arg5: memref<1x32xf32, #tpu.memory_space<vmem>>, %arg6: memref<32x32xf32, #tpu.memory_space<vmem>>, %arg7: memref<1x32xf32, #tpu.memory_space<vmem>>, %arg8: memref<32x128xf32, #tpu.memory_space<vmem>>, %arg9: memref<32x128xf32, #tpu.memory_space<vmem>>, %arg10: memref<1x128xf32, #tpu.memory_space<vmem>>, %arg11: memref<32x8xf32, #tpu.memory_space<vmem>>, %arg12: memref<1x8xf32, #tpu.memory_space<vmem>>, %arg13: memref<8x8xf32, #tpu.memory_space<vmem>>, %arg14: memref<1x8x128xf32, #tpu.memory_space<vmem>>, %arg15: memref<1x8x32xf32, #tpu.memory_space<vmem>>) attributes {dimension_semantics = [#tpu.dimension_semantics<parallel>], iteration_bounds = array<i64: 2>, scalar_prefetch = 0 : i64, scratch_operands = 2 : i64, tpu.core_type = #tpu.core_type<tc>, window_params = [{transform_indices = @transform_0, window_bounds = array<i64: 8, 675>}, {pipeline_mode = #tpu.pipeline_mode<synchronous>, transform_indices = @transform_1, window_bounds = array<i64: 675, 32>}, {pipeline_mode = #tpu.pipeline_mode<synchronous>, transform_indices = @transform_2, window_bounds = array<i64: 1, 32>}, {pipeline_mode = #tpu.pipeline_mode<synchronous>, transform_indices = @transform_3, window_bounds = array<i64: 32, 32>}, {pipeline_mode = #tpu.pipeline_mode<synchronous>, transform_indices = @transform_4, window_bounds = array<i64: 1, 32>}, {pipeline_mode = #tpu.pipeline_mode<synchronous>, transform_indices = @transform_5, window_bounds = array<i64: 32, 32>}, {pipeline_mode = #tpu.pipeline_mode<synchronous>, transform_indices = @transform_6, window_bounds = array<i64: 1, 32>}, {pipeline_mode = #tpu.pipeline_mode<synchronous>, transform_indices = @transform_7, window_bounds = array<i64: 32, 128>}, {pipeline_mode = #tpu.pipeline_mode<synchronous>, transform_indices = @transform_8, window_bounds = array<i64: 32, 128>}, {pipeline_mode = #tpu.pipeline_mode<synchronous>, transform_indices = @transform_9, window_bounds = array<i64: 1, 128>}, {pipeline_mode = #tpu.pipeline_mode<synchronous>, transform_indices = @transform_10, window_bounds = array<i64: 32, 8>}, {pipeline_mode = #tpu.pipeline_mode<synchronous>, transform_indices = @transform_11, window_bounds = array<i64: 1, 8>}, {transform_indices = @transform_12, window_bounds = array<i64: 8, 8>}]} {
    %c0 = arith.constant 0 : index
    %c0_0 = arith.constant 0 : index
    %0 = vector.load %arg1[%c0, %c0_0] : memref<8x675xf32, #tpu.memory_space<vmem>>, vector<8x675xf32>
    %c0_1 = arith.constant 0 : index
    %c0_2 = arith.constant 0 : index
    %1 = vector.load %arg2[%c0_1, %c0_2] : memref<675x32xf32, #tpu.memory_space<vmem>>, vector<675x32xf32>
    %cst = arith.constant dense<0.000000e+00> : vector<8x32xf32>
    %2 = tpu.matmul %0, %1, %cst {dimension_numbers = #tpu.dot_dimension_numbers<[1], [0], [0], [1], [0, 0, 1, 1], [], []>} : vector<8x675xf32>, vector<675x32xf32>, vector<8x32xf32> -> vector<8x32xf32>
    %c0_3 = arith.constant 0 : index
    %c0_4 = arith.constant 0 : index
    %3 = vector.load %arg3[%c0_3, %c0_4] : memref<1x32xf32, #tpu.memory_space<vmem>>, vector<1x32xf32>
    %4 = vector.broadcast %3 : vector<1x32xf32> to vector<8x32xf32>
    %5 = arith.addf %2, %4 : vector<8x32xf32>
    %cst_5 = arith.constant 0.000000e+00 : f32
    %6 = vector.broadcast %cst_5 : f32 to vector<8x32xf32>
    %7 = arith.maximumf %5, %6 : vector<8x32xf32>
    %c0_6 = arith.constant 0 : index
    %c0_7 = arith.constant 0 : index
    %8 = vector.load %arg4[%c0_6, %c0_7] : memref<32x32xf32, #tpu.memory_space<vmem>>, vector<32x32xf32>
    %cst_8 = arith.constant dense<0.000000e+00> : vector<8x32xf32>
    %9 = tpu.matmul %7, %8, %cst_8 {dimension_numbers = #tpu.dot_dimension_numbers<[1], [0], [0], [1], [0, 0, 1, 1], [], []>} : vector<8x32xf32>, vector<32x32xf32>, vector<8x32xf32> -> vector<8x32xf32>
    %c0_9 = arith.constant 0 : index
    %c0_10 = arith.constant 0 : index
    %10 = vector.load %arg5[%c0_9, %c0_10] : memref<1x32xf32, #tpu.memory_space<vmem>>, vector<1x32xf32>
    %11 = vector.broadcast %10 : vector<1x32xf32> to vector<8x32xf32>
    %12 = arith.addf %9, %11 : vector<8x32xf32>
    %cst_11 = arith.constant 0.000000e+00 : f32
    %13 = vector.broadcast %cst_11 : f32 to vector<8x32xf32>
    %14 = arith.maximumf %12, %13 : vector<8x32xf32>
    %c0_12 = arith.constant 0 : index
    %c0_13 = arith.constant 0 : index
    %15 = vector.load %arg6[%c0_12, %c0_13] : memref<32x32xf32, #tpu.memory_space<vmem>>, vector<32x32xf32>
    %cst_14 = arith.constant dense<0.000000e+00> : vector<8x32xf32>
    %16 = tpu.matmul %14, %15, %cst_14 {dimension_numbers = #tpu.dot_dimension_numbers<[1], [0], [0], [1], [0, 0, 1, 1], [], []>} : vector<8x32xf32>, vector<32x32xf32>, vector<8x32xf32> -> vector<8x32xf32>
    %c0_15 = arith.constant 0 : index
    %c0_16 = arith.constant 0 : index
    %17 = vector.load %arg7[%c0_15, %c0_16] : memref<1x32xf32, #tpu.memory_space<vmem>>, vector<1x32xf32>
    %18 = vector.broadcast %17 : vector<1x32xf32> to vector<8x32xf32>
    %19 = arith.addf %16, %18 : vector<8x32xf32>
    %cst_17 = arith.constant 0.000000e+00 : f32
    %20 = vector.broadcast %cst_17 : f32 to vector<8x32xf32>
    %21 = arith.maximumf %19, %20 : vector<8x32xf32>
    %c0_18 = arith.constant 0 : index
    %c0_19 = arith.constant 0 : index
    %22 = vector.load %arg8[%c0_18, %c0_19] : memref<32x128xf32, #tpu.memory_space<vmem>>, vector<32x128xf32>
    %cst_20 = arith.constant dense<0.000000e+00> : vector<8x128xf32>
    %23 = tpu.matmul %21, %22, %cst_20 {dimension_numbers = #tpu.dot_dimension_numbers<[1], [0], [0], [1], [0, 0, 1, 1], [], []>} : vector<8x32xf32>, vector<32x128xf32>, vector<8x128xf32> -> vector<8x128xf32>
    %c0_21 = arith.constant 0 : index
    %c0_22 = arith.constant 0 : index
    %24 = vector.load %arg10[%c0_21, %c0_22] : memref<1x128xf32, #tpu.memory_space<vmem>>, vector<1x128xf32>
    %25 = vector.broadcast %24 : vector<1x128xf32> to vector<8x128xf32>
    %26 = arith.addf %23, %25 : vector<8x128xf32>
    %27 = vector.shape_cast %26 : vector<8x128xf32> to vector<1x8x128xf32>
    %c0_23 = arith.constant 0 : index
    %c0_24 = arith.constant 0 : index
    %c0_25 = arith.constant 0 : index
    %28 = vector.load %arg14[%c0_23, %c0_24, %c0_25] : memref<1x8x128xf32, #tpu.memory_space<vmem>>, vector<1x8x128xf32>
    tpu.vector_store %arg14[%c0_23, %c0_24, %c0_25], %27 {strides = array<i32>} : memref<1x8x128xf32, #tpu.memory_space<vmem>>, vector<1x8x128xf32>,
    %c0_26 = arith.constant 0 : index
    %c0_27 = arith.constant 0 : index
    %29 = vector.load %arg9[%c0_26, %c0_27] : memref<32x128xf32, #tpu.memory_space<vmem>>, vector<32x128xf32>
    %cst_28 = arith.constant 0.000000e+00 : f32
    %30 = vector.broadcast %cst_28 : f32 to vector<1x32xf32>
    %cst_29 = arith.constant 0.000000e+00 : f32
    %31 = vector.broadcast %cst_29 : f32 to vector<1x32xf32>
    %c0_30 = arith.constant 0 : index
    %c0_31 = arith.constant 0 : index
    %c0_32 = arith.constant 0 : index
    %32 = vector.load %arg14[%c0_30, %c0_31, %c0_32] : memref<1x8x128xf32, #tpu.memory_space<vmem>>, vector<1x1x128xf32>
    %33 = vector.shape_cast %32 : vector<1x1x128xf32> to vector<1x128xf32>
    %cst_33 = arith.constant dense<0.000000e+00> : vector<1x128xf32>
    %34 = tpu.matmul %30, %29, %cst_33 {dimension_numbers = #tpu.dot_dimension_numbers<[1], [0], [0], [1], [0, 0, 1, 1], [], []>} : vector<1x32xf32>, vector<32x128xf32>, vector<1x128xf32> -> vector<1x128xf32>
    %35 = arith.addf %33, %34 : vector<1x128xf32>
    %36 = arith.negf %35 : vector<1x128xf32>
    %37 = math.exp %36 : vector<1x128xf32>
    %cst_34 = arith.constant 1.000000e+00 : f32
    %38 = vector.broadcast %cst_34 : f32 to vector<1x128xf32>
    %39 = arith.addf %38, %37 : vector<1x128xf32>
    %40 = arith.divf %38, %39 : vector<1x128xf32>
    %41 = math.tanh %35 : vector<1x128xf32>
    %42 = vector.extract_strided_slice %40 {offsets = [0, 0], sizes = [1, 32], strides = [1, 1]} : vector<1x128xf32> to vector<1x32xf32>
    %43 = vector.extract_strided_slice %40 {offsets = [0, 32], sizes = [1, 32], strides = [1, 1]} : vector<1x128xf32> to vector<1x32xf32>
    %44 = vector.extract_strided_slice %41 {offsets = [0, 64], sizes = [1, 32], strides = [1, 1]} : vector<1x128xf32> to vector<1x32xf32>
    %45 = vector.extract_strided_slice %40 {offsets = [0, 96], sizes = [1, 32], strides = [1, 1]} : vector<1x128xf32> to vector<1x32xf32>
    %46 = arith.mulf %43, %31 : vector<1x32xf32>
    %47 = arith.mulf %42, %44 : vector<1x32xf32>
    %48 = arith.addf %46, %47 : vector<1x32xf32>
    %49 = math.tanh %48 : vector<1x32xf32>
    %50 = arith.mulf %45, %49 : vector<1x32xf32>
    %c0_35 = arith.constant 0 : index
    %c0_36 = arith.constant 0 : index
    %c0_37 = arith.constant 0 : index
    %51 = vector.load %arg15[%c0_35, %c0_36, %c0_37] : memref<1x8x32xf32, #tpu.memory_space<vmem>>, vector<1x1x32xf32>
    %52 = vector.shape_cast %51 : vector<1x1x32xf32> to vector<1x32xf32>
    %53 = vector.shape_cast %50 : vector<1x32xf32> to vector<1x1x32xf32>
    tpu.vector_store %arg15[%c0_35, %c0_36, %c0_37], %53 {strides = array<i32>} : memref<1x8x32xf32, #tpu.memory_space<vmem>>, vector<1x1x32xf32>,
    %c0_38 = arith.constant 0 : index
    %c1 = arith.constant 1 : index
    %c0_39 = arith.constant 0 : index
    %54 = vector.load %arg14[%c0_38, %c1, %c0_39] : memref<1x8x128xf32, #tpu.memory_space<vmem>>, vector<1x1x128xf32>
    %55 = vector.shape_cast %54 : vector<1x1x128xf32> to vector<1x128xf32>
    %cst_40 = arith.constant dense<0.000000e+00> : vector<1x128xf32>
    %56 = tpu.matmul %50, %29, %cst_40 {dimension_numbers = #tpu.dot_dimension_numbers<[1], [0], [0], [1], [0, 0, 1, 1], [], []>} : vector<1x32xf32>, vector<32x128xf32>, vector<1x128xf32> -> vector<1x128xf32>
    %57 = arith.addf %55, %56 : vector<1x128xf32>
    %58 = arith.negf %57 : vector<1x128xf32>
    %59 = math.exp %58 : vector<1x128xf32>
    %cst_41 = arith.constant 1.000000e+00 : f32
    %60 = vector.broadcast %cst_41 : f32 to vector<1x128xf32>
    %61 = arith.addf %60, %59 : vector<1x128xf32>
    %62 = arith.divf %60, %61 : vector<1x128xf32>
    %63 = math.tanh %57 : vector<1x128xf32>
    %64 = vector.extract_strided_slice %62 {offsets = [0, 0], sizes = [1, 32], strides = [1, 1]} : vector<1x128xf32> to vector<1x32xf32>
    %65 = vector.extract_strided_slice %62 {offsets = [0, 32], sizes = [1, 32], strides = [1, 1]} : vector<1x128xf32> to vector<1x32xf32>
    %66 = vector.extract_strided_slice %63 {offsets = [0, 64], sizes = [1, 32], strides = [1, 1]} : vector<1x128xf32> to vector<1x32xf32>
    %67 = vector.extract_strided_slice %62 {offsets = [0, 96], sizes = [1, 32], strides = [1, 1]} : vector<1x128xf32> to vector<1x32xf32>
    %68 = arith.mulf %65, %48 : vector<1x32xf32>
    %69 = arith.mulf %64, %66 : vector<1x32xf32>
    %70 = arith.addf %68, %69 : vector<1x32xf32>
    %71 = math.tanh %70 : vector<1x32xf32>
    %72 = arith.mulf %67, %71 : vector<1x32xf32>
    %c0_42 = arith.constant 0 : index
    %c1_43 = arith.constant 1 : index
    %c0_44 = arith.constant 0 : index
    %73 = vector.load %arg15[%c0_42, %c1_43, %c0_44] : memref<1x8x32xf32, #tpu.memory_space<vmem>>, vector<1x1x32xf32>
    %74 = vector.shape_cast %73 : vector<1x1x32xf32> to vector<1x32xf32>
    %75 = vector.shape_cast %72 : vector<1x32xf32> to vector<1x1x32xf32>
    tpu.vector_store %arg15[%c0_42, %c1_43, %c0_44], %75 {strides = array<i32>} : memref<1x8x32xf32, #tpu.memory_space<vmem>>, vector<1x1x32xf32>,
    %c0_45 = arith.constant 0 : index
    %c2 = arith.constant 2 : index
    %c0_46 = arith.constant 0 : index
    %76 = vector.load %arg14[%c0_45, %c2, %c0_46] : memref<1x8x128xf32, #tpu.memory_space<vmem>>, vector<1x1x128xf32>
    %77 = vector.shape_cast %76 : vector<1x1x128xf32> to vector<1x128xf32>
    %cst_47 = arith.constant dense<0.000000e+00> : vector<1x128xf32>
    %78 = tpu.matmul %72, %29, %cst_47 {dimension_numbers = #tpu.dot_dimension_numbers<[1], [0], [0], [1], [0, 0, 1, 1], [], []>} : vector<1x32xf32>, vector<32x128xf32>, vector<1x128xf32> -> vector<1x128xf32>
    %79 = arith.addf %77, %78 : vector<1x128xf32>
    %80 = arith.negf %79 : vector<1x128xf32>
    %81 = math.exp %80 : vector<1x128xf32>
    %cst_48 = arith.constant 1.000000e+00 : f32
    %82 = vector.broadcast %cst_48 : f32 to vector<1x128xf32>
    %83 = arith.addf %82, %81 : vector<1x128xf32>
    %84 = arith.divf %82, %83 : vector<1x128xf32>
    %85 = math.tanh %79 : vector<1x128xf32>
    %86 = vector.extract_strided_slice %84 {offsets = [0, 0], sizes = [1, 32], strides = [1, 1]} : vector<1x128xf32> to vector<1x32xf32>
    %87 = vector.extract_strided_slice %84 {offsets = [0, 32], sizes = [1, 32], strides = [1, 1]} : vector<1x128xf32> to vector<1x32xf32>
    %88 = vector.extract_strided_slice %85 {offsets = [0, 64], sizes = [1, 32], strides = [1, 1]} : vector<1x128xf32> to vector<1x32xf32>
    %89 = vector.extract_strided_slice %84 {offsets = [0, 96], sizes = [1, 32], strides = [1, 1]} : vector<1x128xf32> to vector<1x32xf32>
    %90 = arith.mulf %87, %70 : vector<1x32xf32>
    %91 = arith.mulf %86, %88 : vector<1x32xf32>
    %92 = arith.addf %90, %91 : vector<1x32xf32>
    %93 = math.tanh %92 : vector<1x32xf32>
    %94 = arith.mulf %89, %93 : vector<1x32xf32>
    %c0_49 = arith.constant 0 : index
    %c2_50 = arith.constant 2 : index
    %c0_51 = arith.constant 0 : index
    %95 = vector.load %arg15[%c0_49, %c2_50, %c0_51] : memref<1x8x32xf32, #tpu.memory_space<vmem>>, vector<1x1x32xf32>
    %96 = vector.shape_cast %95 : vector<1x1x32xf32> to vector<1x32xf32>
    %97 = vector.shape_cast %94 : vector<1x32xf32> to vector<1x1x32xf32>
    tpu.vector_store %arg15[%c0_49, %c2_50, %c0_51], %97 {strides = array<i32>} : memref<1x8x32xf32, #tpu.memory_space<vmem>>, vector<1x1x32xf32>,
    %c0_52 = arith.constant 0 : index
    %c3 = arith.constant 3 : index
    %c0_53 = arith.constant 0 : index
    %98 = vector.load %arg14[%c0_52, %c3, %c0_53] : memref<1x8x128xf32, #tpu.memory_space<vmem>>, vector<1x1x128xf32>
    %99 = vector.shape_cast %98 : vector<1x1x128xf32> to vector<1x128xf32>
    %cst_54 = arith.constant dense<0.000000e+00> : vector<1x128xf32>
    %100 = tpu.matmul %94, %29, %cst_54 {dimension_numbers = #tpu.dot_dimension_numbers<[1], [0], [0], [1], [0, 0, 1, 1], [], []>} : vector<1x32xf32>, vector<32x128xf32>, vector<1x128xf32> -> vector<1x128xf32>
    %101 = arith.addf %99, %100 : vector<1x128xf32>
    %102 = arith.negf %101 : vector<1x128xf32>
    %103 = math.exp %102 : vector<1x128xf32>
    %cst_55 = arith.constant 1.000000e+00 : f32
    %104 = vector.broadcast %cst_55 : f32 to vector<1x128xf32>
    %105 = arith.addf %104, %103 : vector<1x128xf32>
    %106 = arith.divf %104, %105 : vector<1x128xf32>
    %107 = math.tanh %101 : vector<1x128xf32>
    %108 = vector.extract_strided_slice %106 {offsets = [0, 0], sizes = [1, 32], strides = [1, 1]} : vector<1x128xf32> to vector<1x32xf32>
    %109 = vector.extract_strided_slice %106 {offsets = [0, 32], sizes = [1, 32], strides = [1, 1]} : vector<1x128xf32> to vector<1x32xf32>
    %110 = vector.extract_strided_slice %107 {offsets = [0, 64], sizes = [1, 32], strides = [1, 1]} : vector<1x128xf32> to vector<1x32xf32>
    %111 = vector.extract_strided_slice %106 {offsets = [0, 96], sizes = [1, 32], strides = [1, 1]} : vector<1x128xf32> to vector<1x32xf32>
    %112 = arith.mulf %109, %92 : vector<1x32xf32>
    %113 = arith.mulf %108, %110 : vector<1x32xf32>
    %114 = arith.addf %112, %113 : vector<1x32xf32>
    %115 = math.tanh %114 : vector<1x32xf32>
    %116 = arith.mulf %111, %115 : vector<1x32xf32>
    %c0_56 = arith.constant 0 : index
    %c3_57 = arith.constant 3 : index
    %c0_58 = arith.constant 0 : index
    %117 = vector.load %arg15[%c0_56, %c3_57, %c0_58] : memref<1x8x32xf32, #tpu.memory_space<vmem>>, vector<1x1x32xf32>
    %118 = vector.shape_cast %117 : vector<1x1x32xf32> to vector<1x32xf32>
    %119 = vector.shape_cast %116 : vector<1x32xf32> to vector<1x1x32xf32>
    tpu.vector_store %arg15[%c0_56, %c3_57, %c0_58], %119 {strides = array<i32>} : memref<1x8x32xf32, #tpu.memory_space<vmem>>, vector<1x1x32xf32>,
    %c0_59 = arith.constant 0 : index
    %c4 = arith.constant 4 : index
    %c0_60 = arith.constant 0 : index
    %120 = vector.load %arg14[%c0_59, %c4, %c0_60] : memref<1x8x128xf32, #tpu.memory_space<vmem>>, vector<1x1x128xf32>
    %121 = vector.shape_cast %120 : vector<1x1x128xf32> to vector<1x128xf32>
    %cst_61 = arith.constant dense<0.000000e+00> : vector<1x128xf32>
    %122 = tpu.matmul %116, %29, %cst_61 {dimension_numbers = #tpu.dot_dimension_numbers<[1], [0], [0], [1], [0, 0, 1, 1], [], []>} : vector<1x32xf32>, vector<32x128xf32>, vector<1x128xf32> -> vector<1x128xf32>
    %123 = arith.addf %121, %122 : vector<1x128xf32>
    %124 = arith.negf %123 : vector<1x128xf32>
    %125 = math.exp %124 : vector<1x128xf32>
    %cst_62 = arith.constant 1.000000e+00 : f32
    %126 = vector.broadcast %cst_62 : f32 to vector<1x128xf32>
    %127 = arith.addf %126, %125 : vector<1x128xf32>
    %128 = arith.divf %126, %127 : vector<1x128xf32>
    %129 = math.tanh %123 : vector<1x128xf32>
    %130 = vector.extract_strided_slice %128 {offsets = [0, 0], sizes = [1, 32], strides = [1, 1]} : vector<1x128xf32> to vector<1x32xf32>
    %131 = vector.extract_strided_slice %128 {offsets = [0, 32], sizes = [1, 32], strides = [1, 1]} : vector<1x128xf32> to vector<1x32xf32>
    %132 = vector.extract_strided_slice %129 {offsets = [0, 64], sizes = [1, 32], strides = [1, 1]} : vector<1x128xf32> to vector<1x32xf32>
    %133 = vector.extract_strided_slice %128 {offsets = [0, 96], sizes = [1, 32], strides = [1, 1]} : vector<1x128xf32> to vector<1x32xf32>
    %134 = arith.mulf %131, %114 : vector<1x32xf32>
    %135 = arith.mulf %130, %132 : vector<1x32xf32>
    %136 = arith.addf %134, %135 : vector<1x32xf32>
    %137 = math.tanh %136 : vector<1x32xf32>
    %138 = arith.mulf %133, %137 : vector<1x32xf32>
    %c0_63 = arith.constant 0 : index
    %c4_64 = arith.constant 4 : index
    %c0_65 = arith.constant 0 : index
    %139 = vector.load %arg15[%c0_63, %c4_64, %c0_65] : memref<1x8x32xf32, #tpu.memory_space<vmem>>, vector<1x1x32xf32>
    %140 = vector.shape_cast %139 : vector<1x1x32xf32> to vector<1x32xf32>
    %141 = vector.shape_cast %138 : vector<1x32xf32> to vector<1x1x32xf32>
    tpu.vector_store %arg15[%c0_63, %c4_64, %c0_65], %141 {strides = array<i32>} : memref<1x8x32xf32, #tpu.memory_space<vmem>>, vector<1x1x32xf32>,
    %c0_66 = arith.constant 0 : index
    %c5 = arith.constant 5 : index
    %c0_67 = arith.constant 0 : index
    %142 = vector.load %arg14[%c0_66, %c5, %c0_67] : memref<1x8x128xf32, #tpu.memory_space<vmem>>, vector<1x1x128xf32>
    %143 = vector.shape_cast %142 : vector<1x1x128xf32> to vector<1x128xf32>
    %cst_68 = arith.constant dense<0.000000e+00> : vector<1x128xf32>
    %144 = tpu.matmul %138, %29, %cst_68 {dimension_numbers = #tpu.dot_dimension_numbers<[1], [0], [0], [1], [0, 0, 1, 1], [], []>} : vector<1x32xf32>, vector<32x128xf32>, vector<1x128xf32> -> vector<1x128xf32>
    %145 = arith.addf %143, %144 : vector<1x128xf32>
    %146 = arith.negf %145 : vector<1x128xf32>
    %147 = math.exp %146 : vector<1x128xf32>
    %cst_69 = arith.constant 1.000000e+00 : f32
    %148 = vector.broadcast %cst_69 : f32 to vector<1x128xf32>
    %149 = arith.addf %148, %147 : vector<1x128xf32>
    %150 = arith.divf %148, %149 : vector<1x128xf32>
    %151 = math.tanh %145 : vector<1x128xf32>
    %152 = vector.extract_strided_slice %150 {offsets = [0, 0], sizes = [1, 32], strides = [1, 1]} : vector<1x128xf32> to vector<1x32xf32>
    %153 = vector.extract_strided_slice %150 {offsets = [0, 32], sizes = [1, 32], strides = [1, 1]} : vector<1x128xf32> to vector<1x32xf32>
    %154 = vector.extract_strided_slice %151 {offsets = [0, 64], sizes = [1, 32], strides = [1, 1]} : vector<1x128xf32> to vector<1x32xf32>
    %155 = vector.extract_strided_slice %150 {offsets = [0, 96], sizes = [1, 32], strides = [1, 1]} : vector<1x128xf32> to vector<1x32xf32>
    %156 = arith.mulf %153, %136 : vector<1x32xf32>
    %157 = arith.mulf %152, %154 : vector<1x32xf32>
    %158 = arith.addf %156, %157 : vector<1x32xf32>
    %159 = math.tanh %158 : vector<1x32xf32>
    %160 = arith.mulf %155, %159 : vector<1x32xf32>
    %c0_70 = arith.constant 0 : index
    %c5_71 = arith.constant 5 : index
    %c0_72 = arith.constant 0 : index
    %161 = vector.load %arg15[%c0_70, %c5_71, %c0_72] : memref<1x8x32xf32, #tpu.memory_space<vmem>>, vector<1x1x32xf32>
    %162 = vector.shape_cast %161 : vector<1x1x32xf32> to vector<1x32xf32>
    %163 = vector.shape_cast %160 : vector<1x32xf32> to vector<1x1x32xf32>
    tpu.vector_store %arg15[%c0_70, %c5_71, %c0_72], %163 {strides = array<i32>} : memref<1x8x32xf32, #tpu.memory_space<vmem>>, vector<1x1x32xf32>,
    %c0_73 = arith.constant 0 : index
    %c6 = arith.constant 6 : index
    %c0_74 = arith.constant 0 : index
    %164 = vector.load %arg14[%c0_73, %c6, %c0_74] : memref<1x8x128xf32, #tpu.memory_space<vmem>>, vector<1x1x128xf32>
    %165 = vector.shape_cast %164 : vector<1x1x128xf32> to vector<1x128xf32>
    %cst_75 = arith.constant dense<0.000000e+00> : vector<1x128xf32>
    %166 = tpu.matmul %160, %29, %cst_75 {dimension_numbers = #tpu.dot_dimension_numbers<[1], [0], [0], [1], [0, 0, 1, 1], [], []>} : vector<1x32xf32>, vector<32x128xf32>, vector<1x128xf32> -> vector<1x128xf32>
    %167 = arith.addf %165, %166 : vector<1x128xf32>
    %168 = arith.negf %167 : vector<1x128xf32>
    %169 = math.exp %168 : vector<1x128xf32>
    %cst_76 = arith.constant 1.000000e+00 : f32
    %170 = vector.broadcast %cst_76 : f32 to vector<1x128xf32>
    %171 = arith.addf %170, %169 : vector<1x128xf32>
    %172 = arith.divf %170, %171 : vector<1x128xf32>
    %173 = math.tanh %167 : vector<1x128xf32>
    %174 = vector.extract_strided_slice %172 {offsets = [0, 0], sizes = [1, 32], strides = [1, 1]} : vector<1x128xf32> to vector<1x32xf32>
    %175 = vector.extract_strided_slice %172 {offsets = [0, 32], sizes = [1, 32], strides = [1, 1]} : vector<1x128xf32> to vector<1x32xf32>
    %176 = vector.extract_strided_slice %173 {offsets = [0, 64], sizes = [1, 32], strides = [1, 1]} : vector<1x128xf32> to vector<1x32xf32>
    %177 = vector.extract_strided_slice %172 {offsets = [0, 96], sizes = [1, 32], strides = [1, 1]} : vector<1x128xf32> to vector<1x32xf32>
    %178 = arith.mulf %175, %158 : vector<1x32xf32>
    %179 = arith.mulf %174, %176 : vector<1x32xf32>
    %180 = arith.addf %178, %179 : vector<1x32xf32>
    %181 = math.tanh %180 : vector<1x32xf32>
    %182 = arith.mulf %177, %181 : vector<1x32xf32>
    %c0_77 = arith.constant 0 : index
    %c6_78 = arith.constant 6 : index
    %c0_79 = arith.constant 0 : index
    %183 = vector.load %arg15[%c0_77, %c6_78, %c0_79] : memref<1x8x32xf32, #tpu.memory_space<vmem>>, vector<1x1x32xf32>
    %184 = vector.shape_cast %183 : vector<1x1x32xf32> to vector<1x32xf32>
    %185 = vector.shape_cast %182 : vector<1x32xf32> to vector<1x1x32xf32>
    tpu.vector_store %arg15[%c0_77, %c6_78, %c0_79], %185 {strides = array<i32>} : memref<1x8x32xf32, #tpu.memory_space<vmem>>, vector<1x1x32xf32>,
    %c0_80 = arith.constant 0 : index
    %c7 = arith.constant 7 : index
    %c0_81 = arith.constant 0 : index
    %186 = vector.load %arg14[%c0_80, %c7, %c0_81] : memref<1x8x128xf32, #tpu.memory_space<vmem>>, vector<1x1x128xf32>
    %187 = vector.shape_cast %186 : vector<1x1x128xf32> to vector<1x128xf32>
    %cst_82 = arith.constant dense<0.000000e+00> : vector<1x128xf32>
    %188 = tpu.matmul %182, %29, %cst_82 {dimension_numbers = #tpu.dot_dimension_numbers<[1], [0], [0], [1], [0, 0, 1, 1], [], []>} : vector<1x32xf32>, vector<32x128xf32>, vector<1x128xf32> -> vector<1x128xf32>
    %189 = arith.addf %187, %188 : vector<1x128xf32>
    %190 = arith.negf %189 : vector<1x128xf32>
    %191 = math.exp %190 : vector<1x128xf32>
    %cst_83 = arith.constant 1.000000e+00 : f32
    %192 = vector.broadcast %cst_83 : f32 to vector<1x128xf32>
    %193 = arith.addf %192, %191 : vector<1x128xf32>
    %194 = arith.divf %192, %193 : vector<1x128xf32>
    %195 = math.tanh %189 : vector<1x128xf32>
    %196 = vector.extract_strided_slice %194 {offsets = [0, 0], sizes = [1, 32], strides = [1, 1]} : vector<1x128xf32> to vector<1x32xf32>
    %197 = vector.extract_strided_slice %194 {offsets = [0, 32], sizes = [1, 32], strides = [1, 1]} : vector<1x128xf32> to vector<1x32xf32>
    %198 = vector.extract_strided_slice %195 {offsets = [0, 64], sizes = [1, 32], strides = [1, 1]} : vector<1x128xf32> to vector<1x32xf32>
    %199 = vector.extract_strided_slice %194 {offsets = [0, 96], sizes = [1, 32], strides = [1, 1]} : vector<1x128xf32> to vector<1x32xf32>
    %200 = arith.mulf %197, %180 : vector<1x32xf32>
    %201 = arith.mulf %196, %198 : vector<1x32xf32>
    %202 = arith.addf %200, %201 : vector<1x32xf32>
    %203 = math.tanh %202 : vector<1x32xf32>
    %204 = arith.mulf %199, %203 : vector<1x32xf32>
    %c0_84 = arith.constant 0 : index
    %c7_85 = arith.constant 7 : index
    %c0_86 = arith.constant 0 : index
    %205 = vector.load %arg15[%c0_84, %c7_85, %c0_86] : memref<1x8x32xf32, #tpu.memory_space<vmem>>, vector<1x1x32xf32>
    %206 = vector.shape_cast %205 : vector<1x1x32xf32> to vector<1x32xf32>
    %207 = vector.shape_cast %204 : vector<1x32xf32> to vector<1x1x32xf32>
    tpu.vector_store %arg15[%c0_84, %c7_85, %c0_86], %207 {strides = array<i32>} : memref<1x8x32xf32, #tpu.memory_space<vmem>>, vector<1x1x32xf32>,
    %c0_87 = arith.constant 0 : index
    %c0_88 = arith.constant 0 : index
    %c0_89 = arith.constant 0 : index
    %208 = vector.load %arg15[%c0_87, %c0_88, %c0_89] : memref<1x8x32xf32, #tpu.memory_space<vmem>>, vector<1x8x32xf32>
    %209 = vector.shape_cast %208 : vector<1x8x32xf32> to vector<8x32xf32>
    %c0_90 = arith.constant 0 : index
    %c0_91 = arith.constant 0 : index
    %210 = vector.load %arg11[%c0_90, %c0_91] : memref<32x8xf32, #tpu.memory_space<vmem>>, vector<32x8xf32>
    %cst_92 = arith.constant dense<0.000000e+00> : vector<8x8xf32>
    %211 = tpu.matmul %209, %210, %cst_92 {dimension_numbers = #tpu.dot_dimension_numbers<[1], [0], [0], [1], [0, 0, 1, 1], [], []>} : vector<8x32xf32>, vector<32x8xf32>, vector<8x8xf32> -> vector<8x8xf32>
    %c0_93 = arith.constant 0 : index
    %c0_94 = arith.constant 0 : index
    %212 = vector.load %arg12[%c0_93, %c0_94] : memref<1x8xf32, #tpu.memory_space<vmem>>, vector<1x8xf32>
    %213 = vector.broadcast %212 : vector<1x8xf32> to vector<8x8xf32>
    %214 = arith.addf %211, %213 : vector<8x8xf32>
    %c0_95 = arith.constant 0 : index
    %c0_96 = arith.constant 0 : index
    %215 = vector.load %arg13[%c0_95, %c0_96] : memref<8x8xf32, #tpu.memory_space<vmem>>, vector<8x8xf32>
    tpu.vector_store %arg13[%c0_95, %c0_96], %214 {strides = array<i32>} : memref<8x8xf32, #tpu.memory_space<vmem>>, vector<8x8xf32>,
    return
  }
  func.func @transform_0(%arg0: i32) -> (i32, i32) {
    %c0_i32 = arith.constant 0 : i32
    %c0_i32_0 = arith.constant 0 : i32
    return %arg0, %c0_i32 : i32, i32
  }
  func.func @transform_1(%arg0: i32) -> (i32, i32) {
    %c0_i32 = arith.constant 0 : i32
    %c0_i32_0 = arith.constant 0 : i32
    %c0_i32_1 = arith.constant 0 : i32
    return %c0_i32, %c0_i32_0 : i32, i32
  }
  func.func @transform_2(%arg0: i32) -> (i32, i32) {
    %c0_i32 = arith.constant 0 : i32
    %c0_i32_0 = arith.constant 0 : i32
    %c0_i32_1 = arith.constant 0 : i32
    return %c0_i32, %c0_i32_0 : i32, i32
  }
  func.func @transform_3(%arg0: i32) -> (i32, i32) {
    %c0_i32 = arith.constant 0 : i32
    %c0_i32_0 = arith.constant 0 : i32
    %c0_i32_1 = arith.constant 0 : i32
    return %c0_i32, %c0_i32_0 : i32, i32
  }
  func.func @transform_4(%arg0: i32) -> (i32, i32) {
    %c0_i32 = arith.constant 0 : i32
    %c0_i32_0 = arith.constant 0 : i32
    %c0_i32_1 = arith.constant 0 : i32
    return %c0_i32, %c0_i32_0 : i32, i32
  }
  func.func @transform_5(%arg0: i32) -> (i32, i32) {
    %c0_i32 = arith.constant 0 : i32
    %c0_i32_0 = arith.constant 0 : i32
    %c0_i32_1 = arith.constant 0 : i32
    return %c0_i32, %c0_i32_0 : i32, i32
  }
  func.func @transform_6(%arg0: i32) -> (i32, i32) {
    %c0_i32 = arith.constant 0 : i32
    %c0_i32_0 = arith.constant 0 : i32
    %c0_i32_1 = arith.constant 0 : i32
    return %c0_i32, %c0_i32_0 : i32, i32
  }
  func.func @transform_7(%arg0: i32) -> (i32, i32) {
    %c0_i32 = arith.constant 0 : i32
    %c0_i32_0 = arith.constant 0 : i32
    %c0_i32_1 = arith.constant 0 : i32
    return %c0_i32, %c0_i32_0 : i32, i32
  }
  func.func @transform_8(%arg0: i32) -> (i32, i32) {
    %c0_i32 = arith.constant 0 : i32
    %c0_i32_0 = arith.constant 0 : i32
    %c0_i32_1 = arith.constant 0 : i32
    return %c0_i32, %c0_i32_0 : i32, i32
  }
  func.func @transform_9(%arg0: i32) -> (i32, i32) {
    %c0_i32 = arith.constant 0 : i32
    %c0_i32_0 = arith.constant 0 : i32
    %c0_i32_1 = arith.constant 0 : i32
    return %c0_i32, %c0_i32_0 : i32, i32
  }
  func.func @transform_10(%arg0: i32) -> (i32, i32) {
    %c0_i32 = arith.constant 0 : i32
    %c0_i32_0 = arith.constant 0 : i32
    %c0_i32_1 = arith.constant 0 : i32
    return %c0_i32, %c0_i32_0 : i32, i32
  }
  func.func @transform_11(%arg0: i32) -> (i32, i32) {
    %c0_i32 = arith.constant 0 : i32
    %c0_i32_0 = arith.constant 0 : i32
    %c0_i32_1 = arith.constant 0 : i32
    return %c0_i32, %c0_i32_0 : i32, i32
  }
  func.func @transform_12(%arg0: i32) -> (i32, i32) {
    %c0_i32 = arith.constant 0 : i32
    %c0_i32_0 = arith.constant 0 : i32
    return %arg0, %c0_i32 : i32, i32
  }
}

</mosaic_0001>

<bundles_post_ra>
// kernel: actor_forward.1
= control target key start
LH: loop header
LB: loop body
LE: loop exit
PB: predicated region body
PF: predicated region fallthrough
CT: control target
= control target key end

     0   :  { %17 = vsyncpa [#allocation5], 0  ;;  %s3134_s0 = inlined_call_operand.vmem [shape: f32[16,675], index: 0, kind: input, shape index: {}]   ;;  %s3135_s1 = inlined_call_operand.vmem [shape: f32[675,32], index: 1, kind: input, shape index: {}]   ;;  %s3136_s2 = inlined_call_operand.vmem [shape: f32[1,32], index: 2, kind: input, shape index: {}]   ;;  %s3137_s3 = inlined_call_operand.vmem [shape: f32[32,32], index: 3, kind: input, shape index: {}]   ;;  %s3138_s4 = inlined_call_operand.vmem [shape: f32[1,32], index: 4, kind: input, shape index: {}]   ;;  %s3139_s5 = inlined_call_operand.vmem [shape: f32[32,32], index: 5, kind: input, shape index: {}]   ;;  %s3140_s6 = inlined_call_operand.vmem [shape: f32[1,32], index: 6, kind: input, shape index: {}]   ;;  %s3141_s7 = inlined_call_operand.vmem [shape: f32[32,128], index: 7, kind: input, shape index: {}]   ;;  %s3142_s8 = inlined_call_operand.vmem [shape: f32[32,128], index: 8, kind: input, shape index: {}]   ;;  %s3143_s9 = inlined_call_operand.vmem [shape: f32[1,128], index: 9, kind: input, shape index: {}]   ;;  %s3144_s10 = inlined_call_operand.vmem [shape: f32[32,8], index: 10, kind: input, shape index: {}]   ;;  %s3145_s11 = inlined_call_operand.vmem [shape: f32[1,8], index: 11, kind: input, shape index: {}]   ;;  %s3146_s12 = inlined_call_operand.hbm [shape: f32[16,8], index: 12, kind: output, shape index: {}]  }
   0x1   :  { %19 = vsyncpa [#allocation5 + $0x1], 0  ;;  %s2513_s21 = smov 0   ;;  %s2515_s22 = smov 0  }
   0x2   :  { %s2517_s23 = smov 0   ;;  %s2519_s24 = smov 0  }
   0x3 LB: > { %3150 = sst [smem:[#allocation7_spill]] %s2437_s23  ;;  %s2534_s25 = sadd.s32 4294967295, %s2441_s24   ;;  %s2441_s24 = sphi %s2519_s24, %s3155_s24   ;;  %s2437_s23 = sphi %s2517_s23, %s3157_s23   ;;  %s2433_s22 = sphi %s2515_s22, %s3159_s22   ;;  %s2429_s21 = sphi %s2513_s21, %s3158_s21  }
   0x4   : > { %s1975_s26 = sadd.s32 4294967294, %s2441_s24   ;;  %s2538_s27 = sadd.s32 1, %s2441_s24  }
   0x5   : > { %3151 = sst [smem:[#allocation8_spill]] %s2538_s27  ;;  %s289_s28 = sadd.s32 1, %s2437_s23 }
   0x6   : > { %s286_s29 = ssub.s32 %s2441_s24, %s2538_s27  ;;  %p299_p0 = scmp.ne.s32.totalorder %s2437_s23, %s2433_s22 }
   0x7   : > { %p287_p1 = scmp.eq.s32.totalorder %s286_s29, 0  ;;  %p300_p2 = scmp.eq.s32.totalorder %s2534_s25, 1 }
   0x8   : > { %p305_p3 = scmp.ne.s32.totalorder %s2433_s22, %s2429_s21  ;;  %p306_p4 = scmp.eq.s32.totalorder %s1975_s26, 1 }
   0x9   : > { %s2549_s30 = scalar_select %p287_p1, %s2437_s23, %s289_s28  }
   0xa   : > { %p2551_p5 = por %p300_p2, %p299_p0  ;;  %p2555_p6 = por %p306_p4, %p305_p3 }
   0xb   : > { %3152 = sst [smem:[#allocation9_spill]] %s2549_s30  ;;  %p1978_p7 = scmp.ge.s32.totalorder %s2441_s24, 1 }
   0xc   : > { %p365_p8 = scmp.lt.s32.totalorder %s2441_s24, 3 }
   0xe   : > { %p366_p9 = pnand %p1978_p7, %p365_p8 }
   0xf   : > { %p407_p10 = scmp.lt.s32.totalorder (!%p366_p9), %s2534_s25, 1  ;;  %s2446_s20 = smov (!%p366_p9), 32  }
  0x10   : > { %369 = sbr.rel (%p366_p9) target bundleno = 6427 (0x191b), region = 68  ;;  %s404_s18 = sand.u32 (!%p366_p9), 1, %s2433_s22  }
  0x11   : > { %s1979_s19 = sshll.u32 (!%p366_p9), %s404_s18, 3  ;;  %s1903_s17 = scalar_lea.sflag (!%p366_p9), [#allocation5], %s404_s18 }
  0x12   : > { %s406_s30 = scalar_lea.vmem (!%p366_p9), [#allocation4], %s1979_s19 }
  0x13   : > { %s1916_s23 = sshll.u32 (!%p366_p9), %s406_s30, 4  ;;  %s1917_s23 = int_to_ptr.vmem [resolvable:$true] %s1916_s23 }
  0x15   : > { %v449_v0 = vld [vmem:[%s3135_s1 + $0xf8] sm:$0xff]  ;;  %v448_v2 = vld [vmem:[%s3135_s1 + $0xf0] sm:$0xff]  ;;  %v447_v6 = vld [vmem:[%s3135_s1 + $0xe8] sm:$0xff]  ;;  %s2682_s16 = scalar_select %p407_p10, %s2534_s25, 1  ;;  %vm510_vm0 = vcmask 285696   ;;  %vm514_vm1 = vcmask 1042432  }
  0x16   : > { %v433_v1 = vld [vmem:[%s3135_s1 + $0x78] sm:$0xff]  ;;  %2011 = vmatprep.subr.mxu0 %v449_v0  ;;  %v432_v4 = vld [vmem:[%s3135_s1 + $0x70] sm:$0xff]  ;;  %v431_v8 = vld [vmem:[%s3135_s1 + $0x68] sm:$0xff]  ;;  %vm2444_vm2 = vmmov 0   ;;  %vm740_vm3 = vcmask 261120   ;;  %vm1092_vm4 = vcmask 253952  }
  0x17   : > { %v481_v3 = vld [vmem:[%s3135_s1 + $0x1f8] sm:$0xff]  ;;  %2012 = vmatpush3.msra.mxu0 %v433_v1  ;;  %v480_v7 = vld [vmem:[%s3135_s1 + $0x1f0] sm:$0xff]  ;;  %v479_v10 = vld [vmem:[%s3135_s1 + $0x1e8] sm:$0xff]  ;;  %s2273_s28 = smul.u32 48, %s2682_s16  ;;  %s2008_s16 = sshll.u32 %s2534_s25, 7  ;;  %vm1900_vm5 = vcmask 64512  }
  0x18   : > { %v465_v5 = vld [vmem:[%s3135_s1 + $0x178] sm:$0xff]  ;;  %2046 = vmatprep.subr.mxu1 %v481_v3  ;;  %2013 = vmatprep.subr.mxu0 %v448_v2  ;;  %v464_v9 = vld [vmem:[%s3135_s1 + $0x170] sm:$0xff]  ;;  %v446_v11 = vld [vmem:[%s3135_s1 + $0xe0] sm:$0xff]  ;;  %s3099_s15 = scalar_lea.hbm %s3146_s12, %s2008_s16  ;;  %s2447_s25 = smov [#allocation4]  }
  0x19   : > { %2047 = vmatpush3.msra.mxu1 %v465_v5  ;;  %2014 = vmatpush3.msra.mxu0 %v432_v4  ;;  %v463_v12 = vld [vmem:[%s3135_s1 + $0x168] sm:$0xff]  ;;  %v430_v13 = vld [vmem:[%s3135_s1 + $0x60] sm:$0xff]  ;;  %v445_v15 = vld [vmem:[%s3135_s1 + $0xd8] sm:$0xff]  ;;  %s2736_s27 = scalar_lea.vmem %s3134_s0, %s2273_s28  ;;  %v2443_v5 = vmov 0.0   ;;  %s2381_s28 = scalar_lea.vmem %s1917_s23, 128 }
  0x1a   : > { %2048 = vmatprep.subr.mxu1 %v480_v7  ;;  %2015 = vmatprep.subr.mxu0 %v447_v6  ;;  %v478_v14 = vld [vmem:[%s3135_s1 + $0x1e0] sm:$0xff]  ;;  %v429_v17 = vld [vmem:[%s3135_s1 + $0x58] sm:$0xff]  ;;  %v444_v19 = vld [vmem:[%s3135_s1 + $0xd0] sm:$0xff]  ;;  %p2382_p11 = scmp.ne.s32.totalorder %s1917_s23, %s2381_s28  ;;  %s2385_s19 = sshll.u32 %s2447_s25, 4  ;;  %s2386_s19 = int_to_ptr.vmem [resolvable:$false] %s2385_s19 }
  0x1b   : > { %2049 = vmatpush3.msra.mxu1 %v464_v9  ;;  %2016 = vmatpush3.msra.mxu0 %v431_v8  ;;  %v462_v16 = vld [vmem:[%s3135_s1 + $0x160] sm:$0xff]  ;;  %v477_v18 = vld [vmem:[%s3135_s1 + $0x1d8] sm:$0xff]  ;;  %v428_v21 = vld [vmem:[%s3135_s1 + $0x50] sm:$0xff]  ;;  %p2388_p0 = scmp.lt.s32.totalorder %s1917_s23, %s2386_s19 }
  0x1c   : > { %2050 = vmatprep.subr.mxu1 %v479_v10  ;;  %2017 = vmatprep.subr.mxu0 %v446_v11  ;;  %v461_v20 = vld [vmem:[%s3135_s1 + $0x158] sm:$0xff]  ;;  %v476_v22 = vld [vmem:[%s3135_s1 + $0x1d0] sm:$0xff]  ;;  %v443_v23 = vld [vmem:[%s3135_s1 + $0xc8] sm:$0xff]  ;;  %p2383_p12 = pnand %p2382_p11, %p2551_p5 }
  0x1d   : > { %2051 = vmatpush3.msra.mxu1 %v463_v12  ;;  %2018 = vmatpush3.msra.mxu0 %v430_v13  ;;  %v460_v24 = vld [vmem:[%s3135_s1 + $0x150] sm:$0xff]  ;;  %v427_v25 = vld [vmem:[%s3135_s1 + $0x48] sm:$0xff]  ;;  %v442_v27 = vld [vmem:[%s3135_s1 + $0xc0] sm:$0xff] }
  0x1e   : > { %2052 = vmatprep.subr.mxu1 %v478_v14  ;;  %2019 = vmatprep.subr.mxu0 %v445_v15  ;;  %v475_v26 = vld [vmem:[%s3135_s1 + $0x1c8] sm:$0xff]  ;;  %v426_v29 = vld [vmem:[%s3135_s1 + $0x40] sm:$0xff]  ;;  %v441_v31 = vld [vmem:[%s3135_s1 + $0xb8] sm:$0xff]  ;;  %p2384_p13 = pneg %p2383_p12 }
  0x1f   : > { %2053 = vmatpush3.msra.mxu1 %v462_v16  ;;  %2020 = vmatpush3.msra.mxu0 %v429_v17  ;;  %v459_v28 = vld [vmem:[%s3135_s1 + $0x148] sm:$0xff]  ;;  %v474_v30 = vld [vmem:[%s3135_s1 + $0x1c0] sm:$0xff]  ;;  %v425_v33 = vld [vmem:[%s3135_s1 + $0x38] sm:$0xff] }
  0x20   : > { %2054 = vmatprep.subr.mxu1 %v477_v18  ;;  %2021 = vmatprep.subr.mxu0 %v444_v19  ;;  %v458_v32 = vld [vmem:[%s3135_s1 + $0x140] sm:$0xff]  ;;  %v473_v34 = vld [vmem:[%s3135_s1 + $0x1b8] sm:$0xff]  ;;  %v440_v35 = vld [vmem:[%s3135_s1 + $0xb0] sm:$0xff] }
  0x21   : > { %2055 = vmatpush3.msra.mxu1 %v461_v20  ;;  %2022 = vmatpush3.msra.mxu0 %v428_v21  ;;  %v457_v36 = vld [vmem:[%s3135_s1 + $0x138] sm:$0xff]  ;;  %v424_v37 = vld [vmem:[%s3135_s1 + $0x30] sm:$0xff]  ;;  %v439_v39 = vld [vmem:[%s3135_s1 + $0xa8] sm:$0xff] }
  0x22   : > { %2056 = vmatprep.subr.mxu1 %v476_v22  ;;  %2023 = vmatprep.subr.mxu0 %v443_v23  ;;  %v472_v38 = vld [vmem:[%s3135_s1 + $0x1b0] sm:$0xff]  ;;  %v423_v41 = vld [vmem:[%s3135_s1 + $0x28] sm:$0xff]  ;;  %v438_v43 = vld [vmem:[%s3135_s1 + $0xa0] sm:$0xff] }
  0x23   : > { %2057 = vmatpush3.msra.mxu1 %v460_v24  ;;  %2024 = vmatpush3.msra.mxu0 %v427_v25  ;;  %v456_v40 = vld [vmem:[%s3135_s1 + $0x130] sm:$0xff]  ;;  %v471_v42 = vld [vmem:[%s3135_s1 + $0x1a8] sm:$0xff]  ;;  %v422_v45 = vld [vmem:[%s3135_s1 + $0x20] sm:$0xff] }
  0x24   : > { %2058 = vmatprep.subr.mxu1 %v475_v26  ;;  %2025 = vmatprep.subr.mxu0 %v442_v27  ;;  %v455_v44 = vld [vmem:[%s3135_s1 + $0x128] sm:$0xff]  ;;  %v470_v46 = vld [vmem:[%s3135_s1 + $0x1a0] sm:$0xff]  ;;  %v437_v47 = vld [vmem:[%s3135_s1 + $0x98] sm:$0xff] }
  0x25   : > { %2059 = vmatpush3.msra.mxu1 %v459_v28  ;;  %2026 = vmatpush3.msra.mxu0 %v426_v29  ;;  %v454_v48 = vld [vmem:[%s3135_s1 + $0x120] sm:$0xff]  ;;  %v421_v49 = vld [vmem:[%s3135_s1 + $0x18] sm:$0xff]  ;;  %v436_v51 = vld [vmem:[%s3135_s1 + $0x90] sm:$0xff] }
  0x26   : > { %2060 = vmatprep.subr.mxu1 %v474_v30  ;;  %2027 = vmatprep.subr.mxu0 %v441_v31  ;;  %v469_v50 = vld [vmem:[%s3135_s1 + $0x198] sm:$0xff]  ;;  %v420_v53 = vld [vmem:[%s3135_s1 + $0x10] sm:$0xff]  ;;  %v435_v55 = vld [vmem:[%s3135_s1 + $0x88] sm:$0xff] }
  0x27   : > { %2061 = vmatpush3.msra.mxu1 %v458_v32  ;;  %2028 = vmatpush3.msra.mxu0 %v425_v33  ;;  %v453_v52 = vld [vmem:[%s3135_s1 + $0x118] sm:$0xff]  ;;  %v468_v54 = vld [vmem:[%s3135_s1 + $0x190] sm:$0xff]  ;;  %v419_v57 = vld [vmem:[%s3135_s1 + $0x8] sm:$0xff] }
  0x28   : > { %2062 = vmatprep.subr.mxu1 %v473_v34  ;;  %2029 = vmatprep.subr.mxu0 %v440_v35  ;;  %v452_v56 = vld [vmem:[%s3135_s1 + $0x110] sm:$0xff]  ;;  %v467_v58 = vld [vmem:[%s3135_s1 + $0x188] sm:$0xff]  ;;  %v434_v59 = vld [vmem:[%s3135_s1 + $0x80] sm:$0xff] }
  0x29   : > { %2063 = vmatpush3.msra.mxu1 %v457_v36  ;;  %2030 = vmatpush3.msra.mxu0 %v424_v37  ;;  %v413_v60 = vld [vmem:[%s2736_s27 + $0x8] sm:$0xff]  ;;  %v418_v61 = vld [vmem:[%s3135_s1] sm:$0xff]  ;;  %v415_v2 = vld [vmem:[%s2736_s27 + $0x18] sm:$0xff] }
  0x2a   : > { %2064 = vmatprep.subr.mxu1 %v472_v38  ;;  %2031 = vmatprep.subr.mxu0 %v439_v39  ;;  %v451_v62 = vld [vmem:[%s3135_s1 + $0x108] sm:$0xff]  ;;  %v412_v63 = vld [vmem:[%s2736_s27] sm:$0xff]  ;;  %v497_v3 = vld [vmem:[%s3135_s1 + $0x278] sm:$0xff] }
  0x2b   : > { %2065 = vmatpush3.msra.mxu1 %v456_v40  ;;  %2032 = vmatpush3.msra.mxu0 %v423_v41  ;;  %v466_v0 = vld [vmem:[%s3135_s1 + $0x180] sm:$0xff]  ;;  %v414_v4 = vld [vmem:[%s2736_s27 + $0x10] sm:$0xff]  ;;  %v417_v7 = vld [vmem:[%s2736_s27 + $0x28] sm:$0xff] }
  0x2c   : > { %2066 = vmatprep.subr.mxu1 %v471_v42  ;;  %2033 = vmatprep.subr.mxu0 %v438_v43  ;;  %v450_v1 = vld [vmem:[%s3135_s1 + $0x100] sm:$0xff]  ;;  %v496_v6 = vld [vmem:[%s3135_s1 + $0x270] sm:$0xff]  ;;  %v495_v8 = vld [vmem:[%s3135_s1 + $0x268] sm:$0xff] }
  0x2d   : > { %2067 = vmatpush3.msra.mxu1 %v455_v44  ;;  %2034 = vmatpush3.msra.mxu0 %v422_v45  ;;  %v494_v9 = vld [vmem:[%s3135_s1 + $0x260] sm:$0xff]  ;;  %v493_v10 = vld [vmem:[%s3135_s1 + $0x258] sm:$0xff]  ;;  %v492_v11 = vld [vmem:[%s3135_s1 + $0x250] sm:$0xff] }
  0x2e   : > { %2068 = vmatprep.subr.mxu1 %v470_v46  ;;  %2035 = vmatprep.subr.mxu0 %v437_v47  ;;  %v491_v12 = vld [vmem:[%s3135_s1 + $0x248] sm:$0xff]  ;;  %v490_v13 = vld [vmem:[%s3135_s1 + $0x240] sm:$0xff]  ;;  %v489_v14 = vld [vmem:[%s3135_s1 + $0x238] sm:$0xff] }
  0x2f   : > { %2069 = vmatpush3.msra.mxu1 %v454_v48  ;;  %2036 = vmatpush3.msra.mxu0 %v421_v49  ;;  %v488_v15 = vld [vmem:[%s3135_s1 + $0x230] sm:$0xff]  ;;  %v487_v16 = vld [vmem:[%s3135_s1 + $0x228] sm:$0xff]  ;;  %v486_v17 = vld [vmem:[%s3135_s1 + $0x220] sm:$0xff] }
  0x30   : > { %2070 = vmatprep.subr.mxu1 %v469_v50  ;;  %2037 = vmatprep.subr.mxu0 %v436_v51  ;;  %v485_v18 = vld [vmem:[%s3135_s1 + $0x218] sm:$0xff]  ;;  %v484_v19 = vld [vmem:[%s3135_s1 + $0x210] sm:$0xff]  ;;  %v483_v20 = vld [vmem:[%s3135_s1 + $0x208] sm:$0xff] }
  0x31   : > { %2071 = vmatpush3.msra.mxu1 %v453_v52  ;;  %2038 = vmatpush3.msra.mxu0 %v420_v53  ;;  %v482_v21 = vld [vmem:[%s3135_s1 + $0x200] sm:$0xff]  ;;  %v501_v23 = vld [vmem:[%s3135_s1 + $0x298] sm:$0xff]  ;;  %v500_v24 = vld [vmem:[%s3135_s1 + $0x290] sm:$0xff] }
  0x32   : > { %2072 = vmatprep.subr.mxu1 %v468_v54  ;;  %2039 = vmatprep.subr.mxu0 %v435_v55  ;;  %v502_v22 = vld [vmem:[%s3135_s1 + $0x2a0] sm:$0x7]  ;;  %v499_v25 = vld [vmem:[%s3135_s1 + $0x288] sm:$0xff]  ;;  %v732_v28 = vld [vmem:[%s3137_s3 + $0x18] sm:$0xff] }
  0x33   : > { %2073 = vmatpush3.msra.mxu1 %v452_v56  ;;  %2040 = vmatpush3.msra.mxu0 %v419_v57  ;;  %v498_v26 = vld [vmem:[%s3135_s1 + $0x280] sm:$0xff]  ;;  %v731_v29 = vld [vmem:[%s3137_s3 + $0x10] sm:$0xff]  ;;  %v730_v30 = vld [vmem:[%s3137_s3 + $0x8] sm:$0xff] }
  0x34   : > { %2074 = vmatprep.subr.mxu1 %v467_v58  ;;  %2041 = vmatprep.subr.mxu0 %v434_v59  ;;  %v416_v27 = vld [vmem:[%s2736_s27 + $0x20] sm:$0xff]  ;;  %v818_v45 = vld [vmem:[%s3139_s5 + $0x18] sm:$0xff]  ;;  %v817_v46 = vld [vmem:[%s3139_s5 + $0x10] sm:$0xff]  ;;  %s2445_s27 = smov 64  }
  0x35   : > { %582 = vmatprep.mubr.f32.mxu0 %v413_v60  ;;  %2042 = vmatpush3.msra.mxu0 %v418_v61  ;;  %v729_v31 = vld [vmem:[%s3137_s3] sm:$0xff]  ;;  %v816_v47 = vld [vmem:[%s3139_s5 + $0x8] sm:$0xff]  ;;  %v903_v54 = vld [vmem:[%s3141_s7 + $0x18] sm:$0xff] }
  0x36   : > { %2075 = vmatpush3.msra.mxu1 %v451_v62  ;;  %583 = vmatmul.mubr.f32.vlgmr.msra.gmra.mxu0 %v412_v63  ;;  %v1981_v36 = vld [vmem:[%s3136_s2] ss:$0 sm:$0xff]  ;;  %v902_v55 = vld [vmem:[%s3141_s7 + $0x10] sm:$0xff]  ;;  %v901_v56 = vld [vmem:[%s3141_s7 + $0x8] sm:$0xff] }
  0x37   : > { %2076 = vmatprep.subr.mxu1 %v466_v0  ;;  %658 = vmatprep.subr.mxu0 %v2443_v5  ;;  %v815_v48 = vld [vmem:[%s3139_s5] sm:$0xff]  ;;  %v2924_v58 = vld [vmem:[%s3142_s8 + $0x18] sm:$0xff]  ;;  %v2930_v59 = vld [vmem:[%s3142_s8 + $0x10] sm:$0xff] }
  0x38   : > { %2077 = vmatpush3.msra.mxu1 %v450_v1  ;;  %652 = vmatprep.mubr.f32.mxu1 %v415_v2  ;;  %v1984_v49 = vld [vmem:[%s3138_s4] ss:$0 sm:$0xff]  ;;  %v2937_v60 = vld [vmem:[%s3142_s8 + $0x8] sm:$0xff] }
  0x39   : > { %659 = vmatpush1.msra.mxu0 %v497_v3  ;;  %653 = vmatmul.mubr.f32.vlgmr.msra.gmra.mxu1 %v414_v4  ;;  %v900_v57 = vld [vmem:[%s3141_s7] sm:$0xff] }
  0x3a   : > { %660 = vmatprep.subr.mxu0 %v2443_v5  ;;  %1983 = vmatprep.mubr.msk.f32.mxu0 %vm510_vm0, %v417_v7  ;;  %v2944_v61 = vld [vmem:[%s3142_s8] sm:$0xff] }
  0x3b   : > { %661 = vmatpush1.msra.mxu0 %v496_v6  ;;  %2141 = vmatprep.subr.mxu1 %v2443_v5  ;;  %v1986_v62 = vld [vmem:[%s3140_s6] ss:$0 sm:$0xff] }
  0x3c   : > { %662 = vmatprep.subr.mxu0 %v2443_v5  ;;  %2142 = vmatpush3.msra.mxu1 %v732_v28  ;;  %v1988_v3 = vld [vmem:[%s3143_s9] ss:$0 sm:$0xff] }
  0x3d   : > { %663 = vmatpush1.msra.mxu0 %v495_v8  ;;  %2143 = vmatprep.subr.mxu1 %v2443_v5 }
  0x3e   : > { %664 = vmatprep.subr.mxu0 %v2443_v5  ;;  %2144 = vmatpush3.msra.mxu1 %v731_v29 }
  0x3f   : > { %665 = vmatpush1.msra.mxu0 %v494_v9  ;;  %2145 = vmatprep.subr.mxu1 %v2443_v5 }
  0x40   : > { %666 = vmatprep.subr.mxu0 %v2443_v5  ;;  %2146 = vmatpush3.msra.mxu1 %v730_v30 }
  0x41   : > { %667 = vmatpush1.msra.mxu0 %v493_v10  ;;  %2147 = vmatprep.subr.mxu1 %v2443_v5 }
  0x42   : > { %668 = vmatprep.subr.mxu0 %v2443_v5  ;;  %2148 = vmatpush3.msra.mxu1 %v729_v31 }
  0x43   : > { %669 = vmatpush1.msra.mxu0 %v492_v11  ;;  %2149 = vmatprep.mubr.msk.f32.mxu1 %vm2444_vm2, %v2443_v5 }
  0x44   : > { %670 = vmatprep.subr.mxu0 %v2443_v5  ;;  %2152 = vmatprep.subr.mxu1 %v2443_v5 }
  0x45   : > { %671 = vmatpush1.msra.mxu0 %v491_v12 }
  0x46   : > { %672 = vmatprep.subr.mxu0 %v2443_v5 }
  0x47   : > { %673 = vmatpush1.msra.mxu0 %v490_v13 }
  0x48   : > { %674 = vmatprep.subr.mxu0 %v2443_v5 }
  0x49   : > { %675 = vmatpush1.msra.mxu0 %v489_v14 }
  0x4a   : > { %676 = vmatprep.subr.mxu0 %v2443_v5 }
  0x4b   : > { %677 = vmatpush1.msra.mxu0 %v488_v15 }
  0x4c   : > { %678 = vmatprep.subr.mxu0 %v2443_v5 }
  0x4d   : > { %679 = vmatpush1.msra.mxu0 %v487_v16 }
  0x4e   : > { %680 = vmatprep.subr.mxu0 %v2443_v5 }
  0x4f   : > { %681 = vmatpush1.msra.mxu0 %v486_v17 }
  0x50   : > { %682 = vmatprep.subr.mxu0 %v2443_v5 }
  0x51   : > { %683 = vmatpush1.msra.mxu0 %v485_v18 }
  0x52   : > { %684 = vmatprep.subr.mxu0 %v2443_v5 }
  0x53   : > { %685 = vmatpush1.msra.mxu0 %v484_v19 }
  0x54   : > { %686 = vmatprep.subr.mxu0 %v2443_v5 }
  0x55   : > { %687 = vmatpush1.msra.mxu0 %v483_v20 }
  0x56   : > { %688 = vmatprep.subr.mxu0 %v2443_v5 }
  0x57   : > { %689 = vmatpush1.msra.mxu0 %v482_v21 }
  0x58   : > { %712 = vmatprep.subr.mxu0 %v2443_v5 }
  0x59   : > { %1982 = vmatpush2.msk.msra.mxu0 %vm514_vm1, %v502_v22 }
  0x5a   : > { %714 = vmatprep.subr.mxu0 %v2443_v5 }
  0x5b   : > { %715 = vmatpush2.msra.mxu0 %v501_v23 }
  0x5c   : > { %716 = vmatprep.subr.mxu0 %v2443_v5 }
  0x5d   : > { %717 = vmatpush2.msra.mxu0 %v500_v24 }
  0x5e   : > { %718 = vmatprep.subr.mxu0 %v2443_v5 }
  0x5f   : > { %719 = vmatpush2.msra.mxu0 %v499_v25 }
  0x60   : > { %720 = vmatprep.subr.mxu0 %v2443_v5 }
  0x61   : > { %721 = vmatpush2.msra.mxu0 %v498_v26 }
  0x62   : > { %723 = vmatmul.mubr.f32.vlgmr.msra.gmra.mxu0 %v416_v27  ;;  %2207 = vmatprep.subr.mxu0 %v2443_v5 }
  0x63   : > { %2215 = vmatprep.mubr.msk.f32.mxu0 %vm2444_vm2, %v2443_v5  ;;  %2208 = vmatpush3.msra.mxu0 %v2924_v58 }
  0x64   : > { %2209 = vmatprep.subr.mxu0 %v2443_v5 }
  0x65   : > { %2210 = vmatpush3.msra.mxu0 %v2930_v59 }
  0x66   : > { %2211 = vmatprep.subr.mxu0 %v2443_v5 }
  0x67   : > { %2212 = vmatpush3.msra.mxu0 %v2937_v60 }
  0x68   : > { %2213 = vmatprep.subr.mxu0 %v2443_v5 }
  0x69   : > { %2214 = vmatpush3.msra.mxu0 %v2944_v61 }
  0x6a   : > { %2229 = vmatprep.subr.mxu0 %v2443_v5 }
  0xf6   : > { %v2043_v32 = vpop.f32.mrf.mxu0 }
  0xf8   : > { %v2044_v33 = vpop.f32.mrf.mxu0 }
  0xf9   : > { %v2078_v34 = vpop.f32.mrf.mxu1  ;;  %v2045_v35 = vadd.f32 %v2044_v33, %v2043_v32 }
  0xfb   : > { %v2079_v37 = vpop.f32.mrf.mxu1  ;;  %v585_v38 = vadd.f32 %v2045_v35, %v1981_v36 }
  0xfc   : > { %v2080_v39 = vadd.f32 %v2079_v37, %v2078_v34 }
  0xfe   : > { %v655_v40 = vadd.f32 %v2080_v39, %v585_v38 }
 0x122   : > { %v724_v41 = vpop.f32.mrf.mxu0 }
 0x123   : > { %v725_v42 = vadd.f32 %v724_v41, %v655_v40 }
 0x124   : > { %v726_v43 = vpop.f32.mrf.mxu0 }
 0x125   : > { %v728_v44 = vmax.f32 %v725_v42, 0.0 }
 0x127   : > { %2150 = vmatmul.mubr.msk.f32.vlgmr.msra.gmra.mxu1 %vm740_vm3, %v728_v44 }
 0x128   : > { %2153 = vmatpush3.msra.mxu1 %v818_v45  ;;  %2160 = vmatprep.mubr.msk.f32.mxu1 %vm2444_vm2, %v2443_v5 }
 0x129   : > { %2154 = vmatprep.subr.mxu1 %v2443_v5 }
 0x12a   : > { %2155 = vmatpush3.msra.mxu1 %v817_v46 }
 0x12b   : > { %2156 = vmatprep.subr.mxu1 %v2443_v5 }
 0x12c   : > { %2157 = vmatpush3.msra.mxu1 %v816_v47 }
 0x12d   : > { %2158 = vmatprep.subr.mxu1 %v2443_v5 }
 0x12e   : > { %2159 = vmatpush3.msra.mxu1 %v815_v48 }
 0x12f   : > { %2163 = vmatprep.subr.mxu1 %v2443_v5 }
 0x1e7   : > { %v810_v50 = vpop.f32.mrf.mxu1 }
 0x1e8   : > { %v811_v51 = vadd.f32 %v1984_v49, %v810_v50 }
 0x1e9   : > { %v2151_v52 = vpop.f32.mrf.mxu1 }
 0x1ea   : > { %v814_v53 = vmax.f32 %v811_v51, 0.0 }
 0x1ec   : > { %2161 = vmatmul.mubr.msk.f32.vlgmr.msra.gmra.mxu1 %vm740_vm3, %v814_v53 }
 0x1ed   : > { %2164 = vmatpush3.msra.mxu1 %v903_v54  ;;  %2171 = vmatprep.mubr.msk.f32.mxu1 %vm2444_vm2, %v2443_v5 }
 0x1ee   : > { %2165 = vmatprep.subr.mxu1 %v2443_v5 }
 0x1ef   : > { %2166 = vmatpush3.msra.mxu1 %v902_v55 }
 0x1f0   : > { %2167 = vmatprep.subr.mxu1 %v2443_v5 }
 0x1f1   : > { %2168 = vmatpush3.msra.mxu1 %v901_v56 }
 0x1f2   : > { %2169 = vmatprep.subr.mxu1 %v2443_v5 }
 0x1f3   : > { %2170 = vmatpush3.msra.mxu1 %v900_v57 }
 0x1f4   : > { %2174 = vmatprep.subr.mxu1 %v2443_v5 }
 0x2ac   : > { %v895_v63 = vpop.f32.mrf.mxu1 }
 0x2ad   : > { %v896_v0 = vadd.f32 %v1986_v62, %v895_v63 }
 0x2ae   : > { %v2162_v1 = vpop.f32.mrf.mxu1 }
 0x2af   : > { %v899_v2 = vmax.f32 %v896_v0, 0.0 }
 0x2b1   : > { %2172 = vmatmul.mubr.msk.f32.vlgmr.msra.gmra.mxu1 %vm740_vm3, %v899_v2 }
 0x2b2   : > { %2175 = vmatpush3.msra.mxu1 %v2924_v58  ;;  %2182 = vmatprep.mubr.msk.f32.mxu1 %vm2444_vm2, %v2443_v5 }
 0x2b3   : > { %2176 = vmatprep.subr.mxu1 %v2443_v5 }
 0x2b4   : > { %2177 = vmatpush3.msra.mxu1 %v2930_v59 }
 0x2b5   : > { %2178 = vmatprep.subr.mxu1 %v2443_v5 }
 0x2b6   : > { %2179 = vmatpush3.msra.mxu1 %v2937_v60 }
 0x2b7   : > { %2180 = vmatprep.subr.mxu1 %v2443_v5 }
 0x2b8   : > { %2181 = vmatpush3.msra.mxu1 %v2944_v61 }
 0x2b9   : > { %2183 = vmatmul.mubr.f32.vlgmr.msra.gmra.mxu1 %v2443_v5  ;;  %2185 = vmatprep.subr.mxu1 %v2443_v5 }
 0x2ba   : > { %2186 = vmatpush3.msra.mxu1 %v2924_v58  ;;  %2193 = vmatprep.mubr.msk.f32.mxu1 %vm2444_vm2, %v2443_v5 }
 0x2bb   : > { %2187 = vmatprep.subr.mxu1 %v2443_v5 }
 0x2bc   : > { %2188 = vmatpush3.msra.mxu1 %v2930_v59 }
 0x2bd   : > { %2189 = vmatprep.subr.mxu1 %v2443_v5 }
 0x2be   : > { %2190 = vmatpush3.msra.mxu1 %v2937_v60 }
 0x2bf   : > { %2191 = vmatprep.subr.mxu1 %v2443_v5 }
 0x2c0   : > { %2192 = vmatpush3.msra.mxu1 %v2944_v61 }
 0x2c1   : > { %2196 = vmatprep.subr.mxu1 %v2443_v5 }
 0x371   : > { %v980_v4 = vpop.f32.mrf.mxu1 }
 0x372   : > { %v981_v6 = vadd.f32 %v1988_v3, %v980_v4 }
 0x373   : > { %v2173_v7 = vpop.f32.mrf.mxu1 }
 0x374   : > { %984 = vst [vmem:[#allocation2] sm:$0xff] %v981_v6 }
 0x379   : > { %v1059_v8 = vpop.f32.mrf.mxu1 }
 0x37b   : > { %v989_v9 = vld [vmem:[#allocation2] sm:$0x1]  ;;  %v2184_v10 = vpop.f32.mrf.mxu1  ;;  %v1094_v26 = vld [vmem:[#allocation2 + $0x1] sm:$0x1]  ;;  %v1197_v44 = vld [vmem:[#allocation2 + $0x2] sm:$0x1] }
 0x37c   : > { %v1063_v11 = vadd.f32 %v1059_v8, %v989_v9  ;;  %v1300_v2 = vld [vmem:[#allocation2 + $0x3] sm:$0x1] }
 0x37e   : > { %2317 = vtanh.f32 %v1063_v11  ;;  %v1990_v13 = vmul.f32 -1.442695, %v1063_v11 }
 0x380   : > { %2319 = vpow2.f32 %v1990_v13 }
 0x38b   : > { %v2318_v12 = vpop.eup %2317 }
 0x38c   : > { %1073 = vrot.lane.b32.xlu0 %v2318_v12, %s2445_s27 }
 0x38d   : > { %v2320_v14 = vpop.eup %2319 }
 0x38e   : > { %v1067_v15 = vadd.f32 1.0, %v2320_v14 }
 0x390   : > { %2321 = vrcp.f32 %v1067_v15 }
 0x39d   : > { %v2322_v16 = vpop.eup %2321 }
 0x39e   : > { %v1071_v19 = vmul.f32 0.0, %v2322_v16 }
 0x3fe   : > { %v1074_v17 = vpop.permute.xlu0 %1073 }
 0x3ff   : > { %v1076_v18 = vmul.f32 %v2322_v16, %v1074_v17 }
 0x401   : > { %1078 = vrot.lane.b32.xlu0 %v1076_v18, %s2446_s20 }
 0x473   : > { %v1079_v20 = vpop.permute.xlu0 %1078 }
 0x474   : > { %v1081_v21 = vadd.f32 %v1079_v20, %v1071_v19 }
 0x476   : > { %2323 = vtanh.f32 %v1081_v21 }
 0x483   : > { %v2324_v22 = vpop.eup %2323 }
 0x484   : > { %1084 = vrot.lane.b32.xlu1 %v2324_v22, %s2445_s27 }
 0x4f6   : > { %v1085_v23 = vpop.permute.xlu1 %1084 }
 0x4f7   : > { %v1087_v24 = vmul.f32 %v2322_v16, %v1085_v23 }
 0x4f9   : > { %1089 = vrot.lane.b32.xlu1 %v1087_v24, %s2446_s20 }
 0x56b   : > { %v1090_v25 = vpop.permute.xlu1 %1089 }
 0x56c   : > { %1093 = vst.msk [vmem:[#allocation3] sm:$0x1] %vm1092_vm4, %v1090_v25  ;;  %2194 = vmatmul.mubr.msk.f32.vlgmr.msra.gmra.mxu1 %vm740_vm3, %v1090_v25 }
 0x56d   : > { %2197 = vmatpush3.msra.mxu1 %v2924_v58  ;;  %2204 = vmatprep.mubr.msk.f32.mxu1 %vm2444_vm2, %v2443_v5 }
 0x56e   : > { %2198 = vmatprep.subr.mxu1 %v2443_v5 }
 0x56f   : > { %2199 = vmatpush3.msra.mxu1 %v2930_v59 }
 0x570   : > { %2200 = vmatprep.subr.mxu1 %v2443_v5 }
 0x571   : > { %2201 = vmatpush3.msra.mxu1 %v2937_v60 }
 0x572   : > { %2202 = vmatprep.subr.mxu1 %v2443_v5 }
 0x573   : > { %2203 = vmatpush3.msra.mxu1 %v2944_v61 }
 0x574   : > { %2218 = vmatprep.subr.mxu1 %v2443_v5 }
 0x62c   : > { %v1163_v27 = vpop.f32.mrf.mxu1 }
 0x62d   : > { %v1167_v28 = vadd.f32 %v1163_v27, %v1094_v26 }
 0x62e   : > { %v2195_v29 = vpop.f32.mrf.mxu1 }
 0x62f   : > { %2325 = vtanh.f32 %v1167_v28  ;;  %v1992_v31 = vmul.f32 -1.442695, %v1167_v28 }
 0x631   : > { %2327 = vpow2.f32 %v1992_v31 }
 0x63c   : > { %v2326_v30 = vpop.eup %2325 }
 0x63d   : > { %1177 = vrot.lane.b32.xlu0 %v2326_v30, %s2445_s27 }
 0x63e   : > { %v2328_v32 = vpop.eup %2327 }
 0x63f   : > { %v1171_v33 = vadd.f32 1.0, %v2328_v32 }
 0x641   : > { %2329 = vrcp.f32 %v1171_v33 }
 0x64e   : > { %v2330_v34 = vpop.eup %2329 }
 0x64f   : > { %v1175_v37 = vmul.f32 %v2330_v34, %v1081_v21  ;;  %v1403_v21 = vld [vmem:[#allocation2 + $0x4] sm:$0x1] }
 0x6af   : > { %v1178_v35 = vpop.permute.xlu0 %1177 }
 0x6b0   : > { %v1180_v36 = vmul.f32 %v2330_v34, %v1178_v35 }
 0x6b2   : > { %1182 = vrot.lane.b32.xlu1 %v1180_v36, %s2446_s20 }
 0x724   : > { %v1183_v38 = vpop.permute.xlu1 %1182 }
 0x725   : > { %v1185_v39 = vadd.f32 %v1183_v38, %v1175_v37 }
 0x727   : > { %2331 = vtanh.f32 %v1185_v39 }
 0x734   : > { %v2332_v40 = vpop.eup %2331 }
 0x735   : > { %1188 = vrot.lane.b32.xlu0 %v2332_v40, %s2445_s27 }
 0x7a7   : > { %v1189_v41 = vpop.permute.xlu0 %1188 }
 0x7a8   : > { %v1191_v42 = vmul.f32 %v2330_v34, %v1189_v41 }
 0x7aa   : > { %1193 = vrot.lane.b32.xlu1 %v1191_v42, %s2446_s20 }
 0x81c   : > { %v1194_v43 = vpop.permute.xlu1 %1193 }
 0x81d   : > { %1196 = vst.msk [vmem:[#allocation3 + $0x1] sm:$0x1] %vm1092_vm4, %v1194_v43  ;;  %2205 = vmatmul.mubr.msk.f32.vlgmr.msra.gmra.mxu1 %vm740_vm3, %v1194_v43 }
 0x81e   : > { %2219 = vmatpush3.msra.mxu1 %v2924_v58  ;;  %2226 = vmatprep.mubr.msk.f32.mxu1 %vm2444_vm2, %v2443_v5 }
 0x81f   : > { %2220 = vmatprep.subr.mxu1 %v2443_v5 }
 0x820   : > { %2221 = vmatpush3.msra.mxu1 %v2930_v59 }
 0x821   : > { %2222 = vmatprep.subr.mxu1 %v2443_v5 }
 0x822   : > { %2223 = vmatpush3.msra.mxu1 %v2937_v60 }
 0x823   : > { %2224 = vmatprep.subr.mxu1 %v2443_v5 }
 0x824   : > { %2225 = vmatpush3.msra.mxu1 %v2944_v61 }
 0x825   : > { %2240 = vmatprep.subr.mxu1 %v2443_v5 }
 0x8dd   : > { %v1266_v45 = vpop.f32.mrf.mxu1 }
 0x8de   : > { %v1270_v46 = vadd.f32 %v1266_v45, %v1197_v44 }
 0x8df   : > { %v2206_v47 = vpop.f32.mrf.mxu1 }
 0x8e0   : > { %2333 = vtanh.f32 %v1270_v46  ;;  %v1994_v49 = vmul.f32 -1.442695, %v1270_v46 }
 0x8e2   : > { %2335 = vpow2.f32 %v1994_v49 }
 0x8ed   : > { %v2334_v48 = vpop.eup %2333 }
 0x8ee   : > { %1280 = vrot.lane.b32.xlu0 %v2334_v48, %s2445_s27 }
 0x8ef   : > { %v2336_v50 = vpop.eup %2335 }
 0x8f0   : > { %v1274_v51 = vadd.f32 1.0, %v2336_v50 }
 0x8f2   : > { %2337 = vrcp.f32 %v1274_v51 }
 0x8ff   : > { %v2338_v52 = vpop.eup %2337 }
 0x900   : > { %v1278_v55 = vmul.f32 %v2338_v52, %v1185_v39  ;;  %v1506_v39 = vld [vmem:[#allocation2 + $0x5] sm:$0x1] }
 0x960   : > { %v1281_v53 = vpop.permute.xlu0 %1280 }
 0x961   : > { %v1283_v54 = vmul.f32 %v2338_v52, %v1281_v53  ;;  %v1609_v53 = vld [vmem:[#allocation2 + $0x6] sm:$0x1] }
 0x963   : > { %1285 = vrot.lane.b32.xlu1 %v1283_v54, %s2446_s20 }
 0x9d5   : > { %v1286_v56 = vpop.permute.xlu1 %1285 }
 0x9d6   : > { %v1288_v57 = vadd.f32 %v1286_v56, %v1278_v55 }
 0x9d8   : > { %2339 = vtanh.f32 %v1288_v57 }
 0x9e5   : > { %v2340_v62 = vpop.eup %2339 }
 0x9e6   : > { %1291 = vrot.lane.b32.xlu0 %v2340_v62, %s2445_s27 }
 0xa58   : > { %v1292_v63 = vpop.permute.xlu0 %1291 }
 0xa59   : > { %v1294_v0 = vmul.f32 %v2338_v52, %v1292_v63 }
 0xa5b   : > { %1296 = vrot.lane.b32.xlu1 %v1294_v0, %s2446_s20 }
 0xacd   : > { %v1297_v1 = vpop.permute.xlu1 %1296 }
 0xace   : > { %1299 = vst.msk [vmem:[#allocation3 + $0x2] sm:$0x1] %vm1092_vm4, %v1297_v1  ;;  %2216 = vmatmul.mubr.msk.f32.vlgmr.msra.gmra.mxu0 %vm740_vm3, %v1297_v1 }
 0xacf   : > { %2230 = vmatpush3.msra.mxu0 %v2924_v58  ;;  %2237 = vmatprep.mubr.msk.f32.mxu0 %vm2444_vm2, %v2443_v5 }
 0xad0   : > { %2231 = vmatprep.subr.mxu0 %v2443_v5 }
 0xad1   : > { %2232 = vmatpush3.msra.mxu0 %v2930_v59 }
 0xad2   : > { %2233 = vmatprep.subr.mxu0 %v2443_v5 }
 0xad3   : > { %2234 = vmatpush3.msra.mxu0 %v2937_v60 }
 0xad4   : > { %2235 = vmatprep.subr.mxu0 %v2443_v5 }
 0xad5   : > { %2236 = vmatpush3.msra.mxu0 %v2944_v61 }
 0xad6   : > { %2251 = vmatprep.subr.mxu0 %v2443_v5 }
 0xb8e   : > { %v1369_v3 = vpop.f32.mrf.mxu0 }
 0xb8f   : > { %v1373_v4 = vadd.f32 %v1369_v3, %v1300_v2 }
 0xb90   : > { %v2217_v6 = vpop.f32.mrf.mxu0 }
 0xb91   : > { %2341 = vtanh.f32 %v1373_v4  ;;  %v1996_v8 = vmul.f32 -1.442695, %v1373_v4 }
 0xb93   : > { %2343 = vpow2.f32 %v1996_v8 }
 0xb9e   : > { %v2342_v7 = vpop.eup %2341 }
 0xb9f   : > { %1383 = vrot.lane.b32.xlu0 %v2342_v7, %s2445_s27 }
 0xba0   : > { %v2344_v9 = vpop.eup %2343 }
 0xba1   : > { %v1377_v10 = vadd.f32 1.0, %v2344_v9 }
 0xba3   : > { %2345 = vrcp.f32 %v1377_v10 }
 0xbb0   : > { %v2346_v11 = vpop.eup %2345 }
 0xbb1   : > { %v1381_v14 = vmul.f32 %v2346_v11, %v1288_v57 }
 0xc11   : > { %v1384_v12 = vpop.permute.xlu0 %1383 }
 0xc12   : > { %v1386_v13 = vmul.f32 %v2346_v11, %v1384_v12  ;;  %v1712_v12 = vld [vmem:[#allocation2 + $0x7] sm:$0x1] }
 0xc14   : > { %1388 = vrot.lane.b32.xlu1 %v1386_v13, %s2446_s20 }
 0xc86   : > { %v1389_v15 = vpop.permute.xlu1 %1388 }
 0xc87   : > { %v1391_v16 = vadd.f32 %v1389_v15, %v1381_v14 }
 0xc89   : > { %2347 = vtanh.f32 %v1391_v16 }
 0xc96   : > { %v2348_v17 = vpop.eup %2347 }
 0xc97   : > { %1394 = vrot.lane.b32.xlu0 %v2348_v17, %s2445_s27 }
 0xd09   : > { %v1395_v18 = vpop.permute.xlu0 %1394 }
 0xd0a   : > { %v1397_v19 = vmul.f32 %v2346_v11, %v1395_v18 }
 0xd0c   : > { %1399 = vrot.lane.b32.xlu1 %v1397_v19, %s2446_s20 }
 0xd7e   : > { %v1400_v20 = vpop.permute.xlu1 %1399 }
 0xd7f   : > { %1402 = vst.msk [vmem:[#allocation3 + $0x3] sm:$0x1] %vm1092_vm4, %v1400_v20  ;;  %2227 = vmatmul.mubr.msk.f32.vlgmr.msra.gmra.mxu1 %vm740_vm3, %v1400_v20 }
 0xd80   : > { %2241 = vmatpush3.msra.mxu1 %v2924_v58  ;;  %2248 = vmatprep.mubr.msk.f32.mxu1 %vm2444_vm2, %v2443_v5 }
 0xd81   : > { %2242 = vmatprep.subr.mxu1 %v2443_v5 }
 0xd82   : > { %2243 = vmatpush3.msra.mxu1 %v2930_v59 }
 0xd83   : > { %2244 = vmatprep.subr.mxu1 %v2443_v5 }
 0xd84   : > { %2245 = vmatpush3.msra.mxu1 %v2937_v60 }
 0xd85   : > { %2246 = vmatprep.subr.mxu1 %v2443_v5 }
 0xd86   : > { %2247 = vmatpush3.msra.mxu1 %v2944_v61 }
 0xd87   : > { %2262 = vmatprep.subr.mxu1 %v2443_v5 }
 0xe3f   : > { %v1472_v22 = vpop.f32.mrf.mxu1 }
 0xe40   : > { %v1476_v23 = vadd.f32 %v1472_v22, %v1403_v21 }
 0xe41   : > { %v2228_v24 = vpop.f32.mrf.mxu1 }
 0xe42   : > { %2349 = vtanh.f32 %v1476_v23  ;;  %v1998_v26 = vmul.f32 -1.442695, %v1476_v23 }
 0xe44   : > { %2351 = vpow2.f32 %v1998_v26 }
 0xe4f   : > { %v2350_v25 = vpop.eup %2349 }
 0xe50   : > { %1486 = vrot.lane.b32.xlu0 %v2350_v25, %s2445_s27 }
 0xe51   : > { %v2352_v27 = vpop.eup %2351 }
 0xe52   : > { %v1480_v28 = vadd.f32 1.0, %v2352_v27  ;;  %v1819_v27 = vld [vmem:[%s3144_s10 + $0x18] sm:$0xff] }
 0xe54   : > { %2353 = vrcp.f32 %v1480_v28  ;;  %v1818_v28 = vld [vmem:[%s3144_s10 + $0x10] sm:$0xff] }
 0xe61   : > { %v2354_v29 = vpop.eup %2353 }
 0xe62   : > { %v1484_v32 = vmul.f32 %v2354_v29, %v1391_v16 }
 0xec2   : > { %v1487_v30 = vpop.permute.xlu0 %1486 }
 0xec3   : > { %v1489_v31 = vmul.f32 %v2354_v29, %v1487_v30  ;;  %v1816_v30 = vld [vmem:[%s3144_s10] sm:$0xff] }
 0xec5   : > { %1491 = vrot.lane.b32.xlu1 %v1489_v31, %s2446_s20 }
 0xf37   : > { %v1492_v33 = vpop.permute.xlu1 %1491 }
 0xf38   : > { %v1494_v34 = vadd.f32 %v1492_v33, %v1484_v32 }
 0xf3a   : > { %2355 = vtanh.f32 %v1494_v34 }
 0xf47   : > { %v2356_v35 = vpop.eup %2355 }
 0xf48   : > { %1497 = vrot.lane.b32.xlu0 %v2356_v35, %s2445_s27  ;;  %v2005_v35 = vld [vmem:[%s3145_s11] ss:$0 sm:$0xff] }
 0xfba   : > { %v1498_v36 = vpop.permute.xlu0 %1497 }
 0xfbb   : > { %v1500_v37 = vmul.f32 %v2354_v29, %v1498_v36  ;;  %v1817_v29 = vld [vmem:[%s3144_s10 + $0x8] sm:$0xff] }
 0xfbd   : > { %1502 = vrot.lane.b32.xlu1 %v1500_v37, %s2446_s20 }
0x102f   : > { %v1503_v38 = vpop.permute.xlu1 %1502 }
0x1030   : > { %1505 = vst.msk [vmem:[#allocation3 + $0x4] sm:$0x1] %vm1092_vm4, %v1503_v38  ;;  %2238 = vmatmul.mubr.msk.f32.vlgmr.msra.gmra.mxu0 %vm740_vm3, %v1503_v38 }
0x1031   : > { %2252 = vmatpush3.msra.mxu0 %v2924_v58  ;;  %2259 = vmatprep.mubr.msk.f32.mxu0 %vm2444_vm2, %v2443_v5 }
0x1032   : > { %2253 = vmatprep.subr.mxu0 %v2443_v5 }
0x1033   : > { %2254 = vmatpush3.msra.mxu0 %v2930_v59 }
0x1034   : > { %2255 = vmatprep.subr.mxu0 %v2443_v5 }
0x1035   : > { %2256 = vmatpush3.msra.mxu0 %v2937_v60 }
0x1036   : > { %2257 = vmatprep.subr.mxu0 %v2443_v5 }
0x1037   : > { %2258 = vmatpush3.msra.mxu0 %v2944_v61 }
0x10f0   : > { %v1575_v40 = vpop.f32.mrf.mxu0 }
0x10f1   : > { %v1579_v41 = vadd.f32 %v1575_v40, %v1506_v39 }
0x10f2   : > { %v2239_v42 = vpop.f32.mrf.mxu0 }
0x10f3   : > { %2357 = vtanh.f32 %v1579_v41  ;;  %v2000_v43 = vmul.f32 -1.442695, %v1579_v41 }
0x10f5   : > { %2359 = vpow2.f32 %v2000_v43 }
0x1100   : > { %v2358_v58 = vpop.eup %2357 }
0x1101   : > { %1589 = vrot.lane.b32.xlu0 %v2358_v58, %s2445_s27 }
0x1102   : > { %v2360_v44 = vpop.eup %2359 }
0x1103   : > { %v1583_v59 = vadd.f32 1.0, %v2360_v44 }
0x1105   : > { %2361 = vrcp.f32 %v1583_v59 }
0x1112   : > { %v2362_v45 = vpop.eup %2361 }
0x1113   : > { %v1587_v47 = vmul.f32 %v2362_v45, %v1494_v34 }
0x1173   : > { %v1590_v46 = vpop.permute.xlu0 %1589 }
0x1174   : > { %v1592_v60 = vmul.f32 %v2362_v45, %v1590_v46 }
0x1176   : > { %1594 = vrot.lane.b32.xlu1 %v1592_v60, %s2446_s20 }
0x11e8   : > { %v1595_v61 = vpop.permute.xlu1 %1594 }
0x11e9   : > { %v1597_v48 = vadd.f32 %v1595_v61, %v1587_v47 }
0x11eb   : > { %2363 = vtanh.f32 %v1597_v48 }
0x11f8   : > { %v2364_v49 = vpop.eup %2363 }
0x11f9   : > { %1600 = vrot.lane.b32.xlu0 %v2364_v49, %s2445_s27 }
0x126b   : > { %v1601_v50 = vpop.permute.xlu0 %1600 }
0x126c   : > { %v1603_v51 = vmul.f32 %v2362_v45, %v1601_v50 }
0x126e   : > { %1605 = vrot.lane.b32.xlu1 %v1603_v51, %s2446_s20 }
0x12e0   : > { %v1606_v52 = vpop.permute.xlu1 %1605 }
0x12e1   : > { %1608 = vst.msk [vmem:[#allocation3 + $0x5] sm:$0x1] %vm1092_vm4, %v1606_v52  ;;  %2249 = vmatmul.mubr.msk.f32.vlgmr.msra.gmra.mxu1 %vm740_vm3, %v1606_v52 }
0x12e2   : > { %2270 = vmatprep.mubr.msk.f32.mxu1 %vm2444_vm2, %v2443_v5  ;;  %2263 = vmatpush3.msra.mxu1 %v1819_v27 }
0x12e3   : > { %2264 = vmatprep.subr.mxu1 %v2443_v5 }
0x12e4   : > { %2265 = vmatpush3.msra.mxu1 %v1818_v28 }
0x12e5   : > { %2266 = vmatprep.subr.mxu1 %v2443_v5 }
0x12e6   : > { %2267 = vmatpush3.msra.mxu1 %v1817_v29 }
0x12e7   : > { %2268 = vmatprep.subr.mxu1 %v2443_v5 }
0x12e8   : > { %2269 = vmatpush3.msra.mxu1 %v1816_v30 }
0x13a1   : > { %v1678_v54 = vpop.f32.mrf.mxu1 }
0x13a2   : > { %v1682_v55 = vadd.f32 %v1678_v54, %v1609_v53 }
0x13a3   : > { %v2250_v56 = vpop.f32.mrf.mxu1 }
0x13a4   : > { %2365 = vtanh.f32 %v1682_v55  ;;  %v2002_v62 = vmul.f32 -1.442695, %v1682_v55 }
0x13a6   : > { %2367 = vpow2.f32 %v2002_v62 }
0x13b1   : > { %v2366_v57 = vpop.eup %2365 }
0x13b2   : > { %1692 = vrot.lane.b32.xlu0 %v2366_v57, %s2445_s27 }
0x13b3   : > { %v2368_v63 = vpop.eup %2367 }
0x13b4   : > { %v1686_v0 = vadd.f32 1.0, %v2368_v63 }
0x13b6   : > { %2369 = vrcp.f32 %v1686_v0 }
0x13c3   : > { %v2370_v1 = vpop.eup %2369 }
0x13c4   : > { %v1690_v4 = vmul.f32 %v2370_v1, %v1597_v48 }
0x1424   : > { %v1693_v2 = vpop.permute.xlu0 %1692 }
0x1425   : > { %v1695_v3 = vmul.f32 %v2370_v1, %v1693_v2 }
0x1427   : > { %1697 = vrot.lane.b32.xlu1 %v1695_v3, %s2446_s20 }
0x1499   : > { %v1698_v6 = vpop.permute.xlu1 %1697 }
0x149a   : > { %v1700_v7 = vadd.f32 %v1698_v6, %v1690_v4 }
0x149c   : > { %2371 = vtanh.f32 %v1700_v7 }
0x14a9   : > { %v2372_v8 = vpop.eup %2371 }
0x14aa   : > { %1703 = vrot.lane.b32.xlu0 %v2372_v8, %s2445_s27 }
0x151c   : > { %v1704_v9 = vpop.permute.xlu0 %1703 }
0x151d   : > { %v1706_v10 = vmul.f32 %v2370_v1, %v1704_v9 }
0x151f   : > { %1708 = vrot.lane.b32.xlu1 %v1706_v10, %s2446_s20 }
0x1591   : > { %v1709_v11 = vpop.permute.xlu1 %1708 }
0x1592   : > { %1711 = vst.msk [vmem:[#allocation3 + $0x6] sm:$0x1] %vm1092_vm4, %v1709_v11  ;;  %2260 = vmatmul.mubr.msk.f32.vlgmr.msra.gmra.mxu0 %vm740_vm3, %v1709_v11 }
0x1652   : > { %v1781_v13 = vpop.f32.mrf.mxu0 }
0x1653   : > { %v1785_v14 = vadd.f32 %v1781_v13, %v1712_v12 }
0x1654   : > { %v2261_v15 = vpop.f32.mrf.mxu0 }
0x1655   : > { %2373 = vtanh.f32 %v1785_v14  ;;  %v2004_v17 = vmul.f32 -1.442695, %v1785_v14 }
0x1657   : > { %2375 = vpow2.f32 %v2004_v17 }
0x1662   : > { %v2374_v16 = vpop.eup %2373 }
0x1663   : > { %1795 = vrot.lane.b32.xlu0 %v2374_v16, %s2445_s27 }
0x1664   : > { %v2376_v18 = vpop.eup %2375 }
0x1665   : > { %v1789_v19 = vadd.f32 1.0, %v2376_v18 }
0x1667   : > { %2377 = vrcp.f32 %v1789_v19 }
0x1674   : > { %v2378_v20 = vpop.eup %2377 }
0x1675   : > { %v1793_v23 = vmul.f32 %v2378_v20, %v1700_v7 }
0x16d5   : > { %v1796_v21 = vpop.permute.xlu0 %1795 }
0x16d6   : > { %v1798_v22 = vmul.f32 %v2378_v20, %v1796_v21 }
0x16d8   : > { %1800 = vrot.lane.b32.xlu1 %v1798_v22, %s2446_s20 }
0x174a   : > { %v1801_v24 = vpop.permute.xlu1 %1800 }
0x174b   : > { %v1803_v25 = vadd.f32 %v1801_v24, %v1793_v23 }
0x174d   : > { %2379 = vtanh.f32 %v1803_v25 }
0x175a   : > { %v2380_v26 = vpop.eup %2379 }
0x175b   : > { %1806 = vrot.lane.b32.xlu0 %v2380_v26, %s2445_s27  ;;  %s2387_s27 = scalar_lea.vmem %s2386_s19, 256 }
0x175c   : > { %p2389_p1 = scmp.lt.s32.totalorder %s2387_s27, %s2381_s28 }
0x175e   : > { %p2390_p2 = por %p2389_p1, %p2388_p0 }
0x1760   : > { %p2391_p3 = pnand %p2390_p2, %p2384_p13 }
0x17cd   : > { %v1807_v31 = vpop.permute.xlu0 %1806 }
0x17ce   : > { %v1809_v32 = vmul.f32 %v2378_v20, %v1807_v31 }
0x17d0   : > { %1811 = vrot.lane.b32.xlu1 %v1809_v32, %s2446_s20 }
0x1842   : > { %v1812_v33 = vpop.permute.xlu1 %1811 }
0x1843   : > { %1814 = vst.msk [vmem:[#allocation3 + $0x7] sm:$0x1] %vm1092_vm4, %v1812_v33 }
0x184a   : > { %v1815_v34 = vld [vmem:[#allocation3] sm:$0xff] }
0x184b   : > { %2271 = vmatmul.mubr.msk.f32.vlgmr.msra.gmra.mxu1 %vm740_vm3, %v1815_v34 }
0x190b   : > { %v1896_v5 = vpop.f32.mrf.mxu1 }
0x190c   : > { %v1897_v36 = vadd.f32 %v2005_v35, %v1896_v5 }
0x190d   : > { %v2272_v37 = vpop.f32.mrf.mxu1 }
0x190e   : > { %1901 = vst.msk [vmem:[%s406_s30] sm:$0xff] %vm1900_vm5, %v1897_v36 }
0x190f   : > { %2394 = shalt.err (!%p2391_p3)
}
0x1910   : > { %s2395_s26 = scalar_lea.hbm %s3099_s15, 128  ;;  %s2399_s30 = scalar_lea.hbm %s3146_s12, 256 }
0x1911   : > { %p2396_p4 = scmp.ne.s32.totalorder %s3099_s15, %s2395_s26  ;;  %p2400_p9 = scmp.lt.s32.totalorder %s3099_s15, %s3146_s12 }
0x1912   : > { %p2401_p10 = scmp.lt.s32.totalorder %s2399_s30, %s2395_s26 }
0x1913   : > { %p2397_p7 = pnand %p2396_p4, %p2551_p5 }
0x1914   : > { %p2402_p11 = por %p2401_p10, %p2400_p9 }
0x1915   : > { %p2398_p8 = pneg %p2397_p7 }
0x1917   : > { %p2403_p12 = pnand %p2402_p11, %p2398_p8 }
0x1919   : > { %2406 = shalt.err (!%p2403_p12)
}
0x191a   : > { %2274 = dma.vmem_to_hbm [thread:$0]  (%p2551_p5), %s1917_s23, 128, %s3099_s15, %s1903_s17  }
0x191b PF: > { %p2280_p13 = scmp.ge.s32.totalorder %s2441_s24, 2  ;;  %s1928_s28 = sand.u32 1, %s2429_s21  }
0x191c   : > { %s1929_s25 = scalar_lea.sflag [#allocation5], %s1928_s28 }
0x191d   : > { %p2277_p0 = pnand %p2280_p13, %p2555_p6 }
0x191f   : > { %p2278_p1 = pneg %p2277_p0 }
0x1921   : > { %2424 = dma.done.wait (%p2278_p1), %s1929_s25, 128  }
0x1922   : > { %2426 = vsyncadd (%p2278_p1), %s1929_s25, 4294967168  ;;  %s3155_s24 = sld [smem:[#allocation8_spill]]  ;;  %s3158_s21 = smov %s2433_s22 }
0x1923   : > { %s3156_s19 = sld [smem:[#allocation7_spill]] }
0x1924   : > { %s3157_s23 = sld [smem:[#allocation9_spill]] }
0x1928   : > { %p22_p2 = scmp.ge.s32.totalorder %s3155_s24, 4  }
0x1929   : > { %s3159_s22 = smov %s3156_s19 }
0x192a   :  { %24 = sbr.rel (!%p22_p2) target bundleno = 3 (0x3), region = 103 }
0x192f   :  { %1934 = vsyncpa [#allocation5], 1 }
0x1930   :  { %1936 = vsyncpa [#allocation5 + $0x1], 1 }

</bundles_post_ra>
